<compile_context>
chip_gen: v6e
topology: v6e:2x2x1
jax: 0.10.0
libtpu: 0.0.40
codegen_flags: <defaults>
</compile_context>

<pallas_src>
import functools

import numpy as np
import jax
import jax.numpy as jnp
from jax import lax
from jax.experimental import pallas as pl
from jax.experimental.pallas import tpu as pltpu


# ----------------------------- helpers -------------------------------------
def _make_divisible(ch, divisor=8, min_ch=None):
    if min_ch is None:
        min_ch = divisor
    new_ch = max(min_ch, int(ch + divisor / 2) // divisor * divisor)
    if new_ch < 0.9 * ch:
        new_ch += divisor
    return new_ch


def _act(y, act):
    if act == "hardswish":
        return y * jnp.clip(y + 3.0, 0.0, 6.0) * (1.0 / 6.0)
    if act == "relu":
        return jnp.maximum(y, 0.0)
    return y  # identity


def _dw_border_masks(H, W, K):
    """(K*K, H*W) float mask: 1 where the shifted tap stays inside the image."""
    r = (K - 1) // 2
    idx = np.arange(H * W)
    hh, ww = idx // W, idx % W
    rows = []
    for kh in range(K):
        for kw in range(K):
            dh, dw = kh - r, kw - r
            valid = ((hh + dh >= 0) & (hh + dh < H) &
                     (ww + dw >= 0) & (ww + dw < W))
            rows.append(valid.astype(np.float32))
    return jnp.asarray(np.stack(rows))


# ------------------------------ fused kernel --------------------------------
def inverted_residual_kernel(x_ref, taps_ref, w_exp_ref, bias_ref,
                             w_se1_ref, b_se1_ref, w_se2_ref, w_proj_ref,
                             o_ref, *, H, W, K, act, has_expand, use_se, use_res,
                             c_out):
    HW = H * W
    r = (K - 1) // 2

    x = x_ref[0]                                   # (Cin, HW) channels-first, lane-dense, f32

    bias = bias_ref[...]                           # (Cexp, 4): [b_exp | b_dw | b_se2 | b_proj(pad)]
    b_exp = bias[:, 0:1]
    b_dw = bias[:, 1:2]
    b_se2 = bias[:, 2:3]
    b_proj = bias[0:c_out, 3:4]

    # ---- 1x1 expand conv (BN scale pre-folded into weight) + bias + activation ----
    if has_expand:
        h = jnp.dot(w_exp_ref[...], x.astype(jnp.bfloat16),
                    preferred_element_type=jnp.float32)                  # (Cexp, HW), f32 acc
        h = _act(h + b_exp, act)
    else:
        h = x

    # ---- KxK depthwise conv (stride 1) + bias + activation ----
    # Spatial shifts of the flattened axis are XLU lane rotations; each tap plane
    # taps[t] already carries (BN-scaled dw weight) x (border mask), so the inner
    # body is a single fused multiply-add per tap and no padded copy is ever built.
    acc = None
    for kh in range(K):
        for kw in range(K):
            t = kh * K + kw
            s = (kh - r) * W + (kw - r)                  # flattened neighbor offset
            if s == 0:
                shifted = h
            else:
                # shifted[:, i] = h[:, (i + s) % HW]; wrap-around taps are zeroed by the mask
                shifted = pltpu.roll(h, shift=(-s) % HW, axis=1)
            term = shifted * taps_ref[t]
            acc = term if acc is None else acc + term
    h = _act(acc + b_dw, act)

    # ---- Squeeze-Excitation: tiny GEMVs on the VPU/XLU, no transposes ----
    if use_se:
        pooled = jnp.sum(h, axis=1, keepdims=True) * (1.0 / HW)              # (Cexp, 1)
        s1 = jnp.sum(w_se1_ref[...] * pooled, axis=0, keepdims=True)         # (1, Csq)
        s1 = jnp.maximum(s1 + b_se1_ref[...], 0.0)                           # ReLU
        s2 = jnp.sum(w_se2_ref[...] * s1, axis=1, keepdims=True)             # (Cexp, 1)
        s2 = jnp.clip(s2 + b_se2 + 3.0, 0.0, 6.0) * (1.0 / 6.0)              # hardsigmoid
        h = h * s2

    # ---- 1x1 project conv (BN scale pre-folded) + bias + residual ----
    y = jnp.dot(w_proj_ref[...], h.astype(jnp.bfloat16),
                preferred_element_type=jnp.float32)                          # (Cout, HW)
    y = y + b_proj
    if use_res:
        y = y + x
    o_ref[0] = y                                          # lane-dense (Cout, HW) store


# ------------------------------- wrapper -------------------------------------
def inverted_residual_forward(x_nchw, params, cfg):
    N, Cin, H, W = x_nchw.shape
    HW = H * W
    K = cfg["kernel_size"]
    Cexp, Cout = cfg["expanded_channel"], cfg["output_channel"]
    Csq = _make_divisible(Cexp // 4, 8)
    act = "hardswish" if cfg["use_hs"] else "relu"
    has_expand = Cexp != Cin
    assert cfg["stride"] == 1, "only stride=1 implemented"  # TODO(synk): stride=2 path
    assert Cout <= Cexp

    x3 = x_nchw.reshape(N, Cin, HW)          # NCHW is already channels-first -> free reshape
    masks = _dw_border_masks(H, W, K)        # (K*K, HW)

    # --- wrapper-side precomputation (perf feedback) ---
    # Fold BN scales into the conv weights; cast 1x1 conv weights to bf16 for the MXU.
    w_exp = (params["w_exp"] * params["s_exp"]).astype(jnp.bfloat16)      # (Cexp, Cin)
    w_proj = (params["w_proj"] * params["s_proj"]).astype(jnp.bfloat16)   # (Cout, Cexp)
    w_dw_scaled = params["w_dw"] * params["s_dw"]                         # (Cexp, K*K)
    # Combined per-tap planes: taps[t] = outer(BN-scaled dw tap, border mask[t]).
    taps = w_dw_scaled.T[:, :, None] * masks[:, None, :]                  # (K*K, Cexp, HW) ~576 KiB
    taps = taps.astype(jnp.float32)
    # Consolidate the per-channel bias vectors into one (Cexp, 4) constant.
    b_proj_pad = jnp.zeros((Cexp, 1), jnp.float32).at[:Cout, :].set(params["b_proj"])
    bias_pack = jnp.concatenate(
        [params["b_exp"], params["b_dw"], params["b_se2"], b_proj_pad], axis=1)  # (Cexp, 4)

    def const(shape):
        zeros = (0,) * len(shape)
        return pl.BlockSpec(shape, lambda n, z=zeros: z)   # weights stay resident across grid steps

    kernel = functools.partial(
        inverted_residual_kernel, H=H, W=W, K=K, act=act,
        has_expand=has_expand, use_se=cfg["use_se"], use_res=cfg["use_res"], c_out=Cout)

    out = pl.pallas_call(
        kernel,
        out_shape=jax.ShapeDtypeStruct((N, Cout, HW), jnp.float32),
        grid=(N,),
        in_specs=[
            pl.BlockSpec((1, Cin, HW), lambda n: (n, 0, 0)),      # per-image input
            const((K * K, Cexp, HW)),                              # combined tap planes
            const((Cexp, Cin)),                                    # expand weight (BN folded, bf16)
            const((Cexp, 4)),                                      # packed biases
            const((Cexp, Csq)), const((1, Csq)), const((Cexp, Csq)),  # SE (fc1.T, b1, fc2)
            const((Cout, Cexp)),                                   # project weight (BN folded, bf16)
        ],
        out_specs=pl.BlockSpec((1, Cout, HW), lambda n: (n, 0, 0)),
        compiler_params=pltpu.CompilerParams(
            dimension_semantics=("parallel",)),   # one image per TensorCore on v7x
    )(x3, taps, w_exp, bias_pack,
      params["w_se1"], params["b_se1"], params["w_se2"], w_proj)

    return out.reshape(N, Cout, H, W)         # already NCHW: no transpose, no masked stores


# ------------------------- parameter construction ---------------------------
def _bn_fold(keys, C):
    gamma = 1.0 + 0.1 * jax.random.normal(keys[0], (C,), jnp.float32)
    beta = 0.1 * jax.random.normal(keys[1], (C,), jnp.float32)
    mean = 0.1 * jax.random.normal(keys[2], (C,), jnp.float32)
    var = jnp.abs(1.0 + 0.1 * jax.random.normal(keys[3], (C,), jnp.float32))
    eps = 1e-5
    scale = gamma / jnp.sqrt(var + eps)
    bias = beta - mean * scale
    return scale.reshape(C, 1), bias.reshape(C, 1)


def make_params(key, cfg):
    Cin = cfg["input_channel"]
    Cexp = cfg["expanded_channel"]
    Cout = cfg["output_channel"]
    K = cfg["kernel_size"]
    Csq = _make_divisible(Cexp // 4, 8)

    ks = jax.random.split(key, 20)
    p = {}
    p["w_exp"] = 0.1 * jax.random.normal(ks[0], (Cexp, Cin), jnp.float32)    # 1x1 conv weight
    p["s_exp"], p["b_exp"] = _bn_fold(ks[1:5], Cexp)
    p["w_dw"] = 0.1 * jax.random.normal(ks[5], (Cexp, K * K), jnp.float32)   # dw taps per channel
    p["s_dw"], p["b_dw"] = _bn_fold(ks[6:10], Cexp)
    p["w_se1"] = 0.1 * jax.random.normal(ks[10], (Cexp, Csq), jnp.float32)   # fc1.weight.T
    p["b_se1"] = 0.1 * jax.random.normal(ks[11], (1, Csq), jnp.float32)
    p["w_se2"] = 0.1 * jax.random.normal(ks[12], (Cexp, Csq), jnp.float32)   # fc2.weight
    p["b_se2"] = 0.1 * jax.random.normal(ks[13], (Cexp, 1), jnp.float32)
    p["w_proj"] = 0.1 * jax.random.normal(ks[14], (Cout, Cexp), jnp.float32)
    p["s_proj"], p["b_proj"] = _bn_fold(ks[15:19], Cout)
    return p


# ------------------------- pure-JAX reference (NHWC) -------------------------
def reference_forward(x_nchw, params, cfg):
    N, Cin, H, W = x_nchw.shape
    K = cfg["kernel_size"]
    r = (K - 1) // 2
    Cexp, Cout = cfg["expanded_channel"], cfg["output_channel"]
    act = "hardswish" if cfg["use_hs"] else "relu"
    hp_prec = lax.Precision.HIGHEST

    x = jnp.transpose(x_nchw, (0, 2, 3, 1))                                  # NHWC
    h = x
    if Cexp != Cin:
        h = jnp.einsum("nhwc,ec->nhwe", x, params["w_exp"], precision=hp_prec)
        h = _act(h * params["s_exp"].reshape(1, 1, 1, Cexp)
                 + params["b_exp"].reshape(1, 1, 1, Cexp), act)
    hp = jnp.pad(h, ((0, 0), (r, r), (r, r), (0, 0)))
    acc = jnp.zeros_like(h)
    for kh in range(K):
        for kw in range(K):
            acc = acc + (hp[:, kh:kh + H, kw:kw + W, :]
                         * params["w_dw"][:, kh * K + kw].reshape(1, 1, 1, Cexp))
    h = _act(acc * params["s_dw"].reshape(1, 1, 1, Cexp)
             + params["b_dw"].reshape(1, 1, 1, Cexp), act)
    if cfg["use_se"]:
        pooled = jnp.mean(h, axis=(1, 2))                                    # (N, Cexp)
        s1 = jnp.maximum(pooled @ params["w_se1"] + params["b_se1"], 0.0)    # (N, Csq)
        s2 = s1 @ params["w_se2"].T + params["b_se2"].reshape(1, Cexp)       # (N, Cexp)
        s2 = jnp.clip(s2 + 3.0, 0.0, 6.0) / 6.0
        h = h * s2[:, None, None, :]
    y = jnp.einsum("nhwe,oe->nhwo", h, params["w_proj"], precision=hp_prec)
    y = y * params["s_proj"].reshape(1, 1, 1, Cout) + params["b_proj"].reshape(1, 1, 1, Cout)
    if cfg["use_res"]:
        y = y + x
    return jnp.transpose(y, (0, 3, 1, 2))                                    # NCHW


# --------------------------------- main -------------------------------------
if __name__ == "__main__":
    width_multi = 1.0
    cfg = dict(
        input_channel=_make_divisible(16 * width_multi, 8),
        kernel_size=3,
        expanded_channel=_make_divisible(64 * width_multi, 8),
        output_channel=_make_divisible(16 * width_multi, 8),
        use_se=True,
        use_hs=True,     # activation == 'HS'
        stride=1,
    )
    cfg["use_res"] = cfg["stride"] == 1 and cfg["input_channel"] == cfg["output_channel"]

    key = jax.random.PRNGKey(0)
    kx, kp = jax.random.split(key)
    # PyTorch-style NCHW input: (N=2, C=16, H=16, W=16)
    x = jax.random.normal(kx, (2, cfg["input_channel"], 16, 16), jnp.float32)
    params = make_params(kp, cfg)

    out = jax.block_until_ready(inverted_residual_forward(x, params, cfg))
    assert out.shape == (2, cfg["output_channel"], 16, 16)
    assert bool(jnp.all(jnp.isfinite(out)))

    ref = jax.block_until_ready(reference_forward(x, params, cfg))
    np.testing.assert_allclose(np.asarray(out), np.asarray(ref), rtol=2e-2, atol=2e-2)
    print("KERNEL_OK")
</pallas_src>

<mosaic_0001>
module attributes {stable_mosaic.version = 11 : i64} {
  func.func @inverted_residual_kernel(%arg0: i32, %arg1: memref<1x16x256xf32, #tpu.memory_space<vmem>>, %arg2: memref<9x64x256xf32, #tpu.memory_space<vmem>>, %arg3: memref<64x16xbf16, #tpu.memory_space<vmem>>, %arg4: memref<64x4xf32, #tpu.memory_space<vmem>>, %arg5: memref<64x16xf32, #tpu.memory_space<vmem>>, %arg6: memref<1x16xf32, #tpu.memory_space<vmem>>, %arg7: memref<64x16xf32, #tpu.memory_space<vmem>>, %arg8: memref<16x64xbf16, #tpu.memory_space<vmem>>, %arg9: memref<1x16x256xf32, #tpu.memory_space<vmem>>) attributes {dimension_semantics = [#tpu.dimension_semantics<parallel>], iteration_bounds = array<i64: 2>, scalar_prefetch = 0 : i64, scratch_operands = 0 : i64, tpu.core_type = #tpu.core_type<tc>, window_params = [{transform_indices = @transform_0, window_bounds = array<i64: 1, 16, 256>}, {pipeline_mode = #tpu.pipeline_mode<synchronous>, transform_indices = @transform_1, window_bounds = array<i64: 9, 64, 256>}, {pipeline_mode = #tpu.pipeline_mode<synchronous>, transform_indices = @transform_2, window_bounds = array<i64: 64, 16>}, {pipeline_mode = #tpu.pipeline_mode<synchronous>, transform_indices = @transform_3, window_bounds = array<i64: 64, 4>}, {pipeline_mode = #tpu.pipeline_mode<synchronous>, transform_indices = @transform_4, window_bounds = array<i64: 64, 16>}, {pipeline_mode = #tpu.pipeline_mode<synchronous>, transform_indices = @transform_5, window_bounds = array<i64: 1, 16>}, {pipeline_mode = #tpu.pipeline_mode<synchronous>, transform_indices = @transform_6, window_bounds = array<i64: 64, 16>}, {pipeline_mode = #tpu.pipeline_mode<synchronous>, transform_indices = @transform_7, window_bounds = array<i64: 16, 64>}, {transform_indices = @transform_8, window_bounds = array<i64: 1, 16, 256>}]} {
    %c0 = arith.constant 0 : index
    %c0_0 = arith.constant 0 : index
    %c0_1 = arith.constant 0 : index
    %0 = vector.load %arg1[%c0, %c0_0, %c0_1] : memref<1x16x256xf32, #tpu.memory_space<vmem>>, vector<1x16x256xf32>
    %1 = vector.shape_cast %0 : vector<1x16x256xf32> to vector<16x256xf32>
    %c0_2 = arith.constant 0 : index
    %c0_3 = arith.constant 0 : index
    %2 = vector.load %arg4[%c0_2, %c0_3] : memref<64x4xf32, #tpu.memory_space<vmem>>, vector<64x4xf32>
    %3 = vector.extract_strided_slice %2 {offsets = [0, 0], sizes = [64, 1], strides = [1, 1]} : vector<64x4xf32> to vector<64x1xf32>
    %4 = vector.extract_strided_slice %2 {offsets = [0, 1], sizes = [64, 1], strides = [1, 1]} : vector<64x4xf32> to vector<64x1xf32>
    %5 = vector.extract_strided_slice %2 {offsets = [0, 2], sizes = [64, 1], strides = [1, 1]} : vector<64x4xf32> to vector<64x1xf32>
    %6 = vector.extract_strided_slice %2 {offsets = [0, 3], sizes = [16, 1], strides = [1, 1]} : vector<64x4xf32> to vector<16x1xf32>
    %c0_4 = arith.constant 0 : index
    %c0_5 = arith.constant 0 : index
    %7 = vector.load %arg3[%c0_4, %c0_5] : memref<64x16xbf16, #tpu.memory_space<vmem>>, vector<64x16xbf16>
    %8 = arith.truncf %1 : vector<16x256xf32> to vector<16x256xbf16>
    %cst = arith.constant dense<0.000000e+00> : vector<64x256xf32>
    %9 = tpu.matmul %7, %8, %cst {dimension_numbers = #tpu.dot_dimension_numbers<[1], [0], [0], [1], [0, 0, 1, 1], [], []>} : vector<64x16xbf16>, vector<16x256xbf16>, vector<64x256xf32> -> vector<64x256xf32>
    %10 = vector.broadcast %3 : vector<64x1xf32> to vector<64x256xf32>
    %11 = arith.addf %9, %10 : vector<64x256xf32>
    %cst_6 = arith.constant 3.000000e+00 : f32
    %12 = vector.broadcast %cst_6 : f32 to vector<64x256xf32>
    %13 = arith.addf %11, %12 : vector<64x256xf32>
    %cst_7 = arith.constant 0.000000e+00 : f32
    %cst_8 = arith.constant 6.000000e+00 : f32
    %14 = vector.broadcast %cst_7 : f32 to vector<64x256xf32>
    %15 = arith.maximumf %14, %13 : vector<64x256xf32>
    %16 = vector.broadcast %cst_8 : f32 to vector<64x256xf32>
    %17 = arith.minimumf %16, %15 : vector<64x256xf32>
    %18 = arith.mulf %11, %17 : vector<64x256xf32>
    %cst_9 = arith.constant 0.166666672 : f32
    %19 = vector.broadcast %cst_9 : f32 to vector<64x256xf32>
    %20 = arith.mulf %18, %19 : vector<64x256xf32>
    %c17_i32 = arith.constant 17 : i32
    %21 = tpu.dynamic_rotate %20 by %c17_i32 dim 1 : vector<64x256xf32>, i32 -> vector<64x256xf32>
    %c0_10 = arith.constant 0 : index
    %c0_11 = arith.constant 0 : index
    %c0_12 = arith.constant 0 : index
    %22 = vector.load %arg2[%c0_10, %c0_11, %c0_12] : memref<9x64x256xf32, #tpu.memory_space<vmem>>, vector<1x64x256xf32>
    %23 = vector.shape_cast %22 : vector<1x64x256xf32> to vector<64x256xf32>
    %24 = arith.mulf %21, %23 : vector<64x256xf32>
    %c16_i32 = arith.constant 16 : i32
    %25 = tpu.dynamic_rotate %20 by %c16_i32 dim 1 : vector<64x256xf32>, i32 -> vector<64x256xf32>
    %c1 = arith.constant 1 : index
    %c0_13 = arith.constant 0 : index
    %c0_14 = arith.constant 0 : index
    %26 = vector.load %arg2[%c1, %c0_13, %c0_14] : memref<9x64x256xf32, #tpu.memory_space<vmem>>, vector<1x64x256xf32>
    %27 = vector.shape_cast %26 : vector<1x64x256xf32> to vector<64x256xf32>
    %28 = arith.mulf %25, %27 : vector<64x256xf32>
    %29 = arith.addf %24, %28 : vector<64x256xf32>
    %c15_i32 = arith.constant 15 : i32
    %30 = tpu.dynamic_rotate %20 by %c15_i32 dim 1 : vector<64x256xf32>, i32 -> vector<64x256xf32>
    %c2 = arith.constant 2 : index
    %c0_15 = arith.constant 0 : index
    %c0_16 = arith.constant 0 : index
    %31 = vector.load %arg2[%c2, %c0_15, %c0_16] : memref<9x64x256xf32, #tpu.memory_space<vmem>>, vector<1x64x256xf32>
    %32 = vector.shape_cast %31 : vector<1x64x256xf32> to vector<64x256xf32>
    %33 = arith.mulf %30, %32 : vector<64x256xf32>
    %34 = arith.addf %29, %33 : vector<64x256xf32>
    %c1_i32 = arith.constant 1 : i32
    %35 = tpu.dynamic_rotate %20 by %c1_i32 dim 1 : vector<64x256xf32>, i32 -> vector<64x256xf32>
    %c3 = arith.constant 3 : index
    %c0_17 = arith.constant 0 : index
    %c0_18 = arith.constant 0 : index
    %36 = vector.load %arg2[%c3, %c0_17, %c0_18] : memref<9x64x256xf32, #tpu.memory_space<vmem>>, vector<1x64x256xf32>
    %37 = vector.shape_cast %36 : vector<1x64x256xf32> to vector<64x256xf32>
    %38 = arith.mulf %35, %37 : vector<64x256xf32>
    %39 = arith.addf %34, %38 : vector<64x256xf32>
    %c4 = arith.constant 4 : index
    %c0_19 = arith.constant 0 : index
    %c0_20 = arith.constant 0 : index
    %40 = vector.load %arg2[%c4, %c0_19, %c0_20] : memref<9x64x256xf32, #tpu.memory_space<vmem>>, vector<1x64x256xf32>
    %41 = vector.shape_cast %40 : vector<1x64x256xf32> to vector<64x256xf32>
    %42 = arith.mulf %20, %41 : vector<64x256xf32>
    %43 = arith.addf %39, %42 : vector<64x256xf32>
    %c255_i32 = arith.constant 255 : i32
    %44 = tpu.dynamic_rotate %20 by %c255_i32 dim 1 : vector<64x256xf32>, i32 -> vector<64x256xf32>
    %c5 = arith.constant 5 : index
    %c0_21 = arith.constant 0 : index
    %c0_22 = arith.constant 0 : index
    %45 = vector.load %arg2[%c5, %c0_21, %c0_22] : memref<9x64x256xf32, #tpu.memory_space<vmem>>, vector<1x64x256xf32>
    %46 = vector.shape_cast %45 : vector<1x64x256xf32> to vector<64x256xf32>
    %47 = arith.mulf %44, %46 : vector<64x256xf32>
    %48 = arith.addf %43, %47 : vector<64x256xf32>
    %c241_i32 = arith.constant 241 : i32
    %49 = tpu.dynamic_rotate %20 by %c241_i32 dim 1 : vector<64x256xf32>, i32 -> vector<64x256xf32>
    %c6 = arith.constant 6 : index
    %c0_23 = arith.constant 0 : index
    %c0_24 = arith.constant 0 : index
    %50 = vector.load %arg2[%c6, %c0_23, %c0_24] : memref<9x64x256xf32, #tpu.memory_space<vmem>>, vector<1x64x256xf32>
    %51 = vector.shape_cast %50 : vector<1x64x256xf32> to vector<64x256xf32>
    %52 = arith.mulf %49, %51 : vector<64x256xf32>
    %53 = arith.addf %48, %52 : vector<64x256xf32>
    %c240_i32 = arith.constant 240 : i32
    %54 = tpu.dynamic_rotate %20 by %c240_i32 dim 1 : vector<64x256xf32>, i32 -> vector<64x256xf32>
    %c7 = arith.constant 7 : index
    %c0_25 = arith.constant 0 : index
    %c0_26 = arith.constant 0 : index
    %55 = vector.load %arg2[%c7, %c0_25, %c0_26] : memref<9x64x256xf32, #tpu.memory_space<vmem>>, vector<1x64x256xf32>
    %56 = vector.shape_cast %55 : vector<1x64x256xf32> to vector<64x256xf32>
    %57 = arith.mulf %54, %56 : vector<64x256xf32>
    %58 = arith.addf %53, %57 : vector<64x256xf32>
    %c239_i32 = arith.constant 239 : i32
    %59 = tpu.dynamic_rotate %20 by %c239_i32 dim 1 : vector<64x256xf32>, i32 -> vector<64x256xf32>
    %c8 = arith.constant 8 : index
    %c0_27 = arith.constant 0 : index
    %c0_28 = arith.constant 0 : index
    %60 = vector.load %arg2[%c8, %c0_27, %c0_28] : memref<9x64x256xf32, #tpu.memory_space<vmem>>, vector<1x64x256xf32>
    %61 = vector.shape_cast %60 : vector<1x64x256xf32> to vector<64x256xf32>
    %62 = arith.mulf %59, %61 : vector<64x256xf32>
    %63 = arith.addf %58, %62 : vector<64x256xf32>
    %64 = vector.broadcast %4 : vector<64x1xf32> to vector<64x256xf32>
    %65 = arith.addf %63, %64 : vector<64x256xf32>
    %cst_29 = arith.constant 3.000000e+00 : f32
    %66 = vector.broadcast %cst_29 : f32 to vector<64x256xf32>
    %67 = arith.addf %65, %66 : vector<64x256xf32>
    %cst_30 = arith.constant 0.000000e+00 : f32
    %cst_31 = arith.constant 6.000000e+00 : f32
    %68 = vector.broadcast %cst_30 : f32 to vector<64x256xf32>
    %69 = arith.maximumf %68, %67 : vector<64x256xf32>
    %70 = vector.broadcast %cst_31 : f32 to vector<64x256xf32>
    %71 = arith.minimumf %70, %69 : vector<64x256xf32>
    %72 = arith.mulf %65, %71 : vector<64x256xf32>
    %cst_32 = arith.constant 0.166666672 : f32
    %73 = vector.broadcast %cst_32 : f32 to vector<64x256xf32>
    %74 = arith.mulf %72, %73 : vector<64x256xf32>
    %cst_33 = arith.constant dense<0.000000e+00> : vector<64xf32>
    %75 = vector.multi_reduction <add>, %74, %cst_33 [1] : vector<64x256xf32> to vector<64xf32>
    %76 = vector.shape_cast %75 : vector<64xf32> to vector<64x1xf32>
    %cst_34 = arith.constant 3.906250e-03 : f32
    %77 = vector.broadcast %cst_34 : f32 to vector<64x1xf32>
    %78 = arith.mulf %76, %77 : vector<64x1xf32>
    %c0_35 = arith.constant 0 : index
    %c0_36 = arith.constant 0 : index
    %79 = vector.load %arg5[%c0_35, %c0_36] : memref<64x16xf32, #tpu.memory_space<vmem>>, vector<64x16xf32>
    %80 = vector.broadcast %78 : vector<64x1xf32> to vector<64x16xf32>
    %81 = arith.mulf %79, %80 : vector<64x16xf32>
    %cst_37 = arith.constant dense<0.000000e+00> : vector<16xf32>
    %82 = vector.multi_reduction <add>, %81, %cst_37 [0] : vector<64x16xf32> to vector<16xf32>
    %83 = vector.shape_cast %82 : vector<16xf32> to vector<1x16xf32>
    %c0_38 = arith.constant 0 : index
    %c0_39 = arith.constant 0 : index
    %84 = vector.load %arg6[%c0_38, %c0_39] : memref<1x16xf32, #tpu.memory_space<vmem>>, vector<1x16xf32>
    %85 = arith.addf %83, %84 : vector<1x16xf32>
    %cst_40 = arith.constant 0.000000e+00 : f32
    %86 = vector.broadcast %cst_40 : f32 to vector<1x16xf32>
    %87 = arith.maximumf %85, %86 : vector<1x16xf32>
    %c0_41 = arith.constant 0 : index
    %c0_42 = arith.constant 0 : index
    %88 = vector.load %arg7[%c0_41, %c0_42] : memref<64x16xf32, #tpu.memory_space<vmem>>, vector<64x16xf32>
    %89 = vector.broadcast %87 : vector<1x16xf32> to vector<64x16xf32>
    %90 = arith.mulf %88, %89 : vector<64x16xf32>
    %cst_43 = arith.constant dense<0.000000e+00> : vector<64xf32>
    %91 = vector.multi_reduction <add>, %90, %cst_43 [1] : vector<64x16xf32> to vector<64xf32>
    %92 = vector.shape_cast %91 : vector<64xf32> to vector<64x1xf32>
    %93 = arith.addf %92, %5 : vector<64x1xf32>
    %cst_44 = arith.constant 3.000000e+00 : f32
    %94 = vector.broadcast %cst_44 : f32 to vector<64x1xf32>
    %95 = arith.addf %93, %94 : vector<64x1xf32>
    %cst_45 = arith.constant 0.000000e+00 : f32
    %cst_46 = arith.constant 6.000000e+00 : f32
    %96 = vector.broadcast %cst_45 : f32 to vector<64x1xf32>
    %97 = arith.maximumf %96, %95 : vector<64x1xf32>
    %98 = vector.broadcast %cst_46 : f32 to vector<64x1xf32>
    %99 = arith.minimumf %98, %97 : vector<64x1xf32>
    %cst_47 = arith.constant 0.166666672 : f32
    %100 = vector.broadcast %cst_47 : f32 to vector<64x1xf32>
    %101 = arith.mulf %99, %100 : vector<64x1xf32>
    %102 = vector.broadcast %101 : vector<64x1xf32> to vector<64x256xf32>
    %103 = arith.mulf %74, %102 : vector<64x256xf32>
    %c0_48 = arith.constant 0 : index
    %c0_49 = arith.constant 0 : index
    %104 = vector.load %arg8[%c0_48, %c0_49] : memref<16x64xbf16, #tpu.memory_space<vmem>>, vector<16x64xbf16>
    %105 = arith.truncf %103 : vector<64x256xf32> to vector<64x256xbf16>
    %cst_50 = arith.constant dense<0.000000e+00> : vector<16x256xf32>
    %106 = tpu.matmul %104, %105, %cst_50 {dimension_numbers = #tpu.dot_dimension_numbers<[1], [0], [0], [1], [0, 0, 1, 1], [], []>} : vector<16x64xbf16>, vector<64x256xbf16>, vector<16x256xf32> -> vector<16x256xf32>
    %107 = vector.broadcast %6 : vector<16x1xf32> to vector<16x256xf32>
    %108 = arith.addf %106, %107 : vector<16x256xf32>
    %109 = arith.addf %108, %1 : vector<16x256xf32>
    %c0_51 = arith.constant 0 : index
    %c0_52 = arith.constant 0 : index
    %c0_53 = arith.constant 0 : index
    %110 = vector.load %arg9[%c0_51, %c0_52, %c0_53] : memref<1x16x256xf32, #tpu.memory_space<vmem>>, vector<1x16x256xf32>
    %111 = vector.shape_cast %110 : vector<1x16x256xf32> to vector<16x256xf32>
    %112 = vector.shape_cast %109 : vector<16x256xf32> to vector<1x16x256xf32>
    tpu.vector_store %arg9[%c0_51, %c0_52, %c0_53], %112 {strides = array<i32>} : memref<1x16x256xf32, #tpu.memory_space<vmem>>, vector<1x16x256xf32>,
    return
  }
  func.func @transform_0(%arg0: i32) -> (i32, i32, i32) {
    %c0_i32 = arith.constant 0 : i32
    %c0_i32_0 = arith.constant 0 : i32
    %c0_i32_1 = arith.constant 0 : i32
    return %arg0, %c0_i32, %c0_i32_0 : i32, i32, i32
  }
  func.func @transform_1(%arg0: i32) -> (i32, i32, i32) {
    %c0_i32 = arith.constant 0 : i32
    %c0_i32_0 = arith.constant 0 : i32
    %c0_i32_1 = arith.constant 0 : i32
    %c0_i32_2 = arith.constant 0 : i32
    return %c0_i32, %c0_i32_0, %c0_i32_1 : i32, i32, i32
  }
  func.func @transform_2(%arg0: i32) -> (i32, i32) {
    %c0_i32 = arith.constant 0 : i32
    %c0_i32_0 = arith.constant 0 : i32
    %c0_i32_1 = arith.constant 0 : i32
    return %c0_i32, %c0_i32_0 : i32, i32
  }
  func.func @transform_3(%arg0: i32) -> (i32, i32) {
    %c0_i32 = arith.constant 0 : i32
    %c0_i32_0 = arith.constant 0 : i32
    %c0_i32_1 = arith.constant 0 : i32
    return %c0_i32, %c0_i32_0 : i32, i32
  }
  func.func @transform_4(%arg0: i32) -> (i32, i32) {
    %c0_i32 = arith.constant 0 : i32
    %c0_i32_0 = arith.constant 0 : i32
    %c0_i32_1 = arith.constant 0 : i32
    return %c0_i32, %c0_i32_0 : i32, i32
  }
  func.func @transform_5(%arg0: i32) -> (i32, i32) {
    %c0_i32 = arith.constant 0 : i32
    %c0_i32_0 = arith.constant 0 : i32
    %c0_i32_1 = arith.constant 0 : i32
    return %c0_i32, %c0_i32_0 : i32, i32
  }
  func.func @transform_6(%arg0: i32) -> (i32, i32) {
    %c0_i32 = arith.constant 0 : i32
    %c0_i32_0 = arith.constant 0 : i32
    %c0_i32_1 = arith.constant 0 : i32
    return %c0_i32, %c0_i32_0 : i32, i32
  }
  func.func @transform_7(%arg0: i32) -> (i32, i32) {
    %c0_i32 = arith.constant 0 : i32
    %c0_i32_0 = arith.constant 0 : i32
    %c0_i32_1 = arith.constant 0 : i32
    return %c0_i32, %c0_i32_0 : i32, i32
  }
  func.func @transform_8(%arg0: i32) -> (i32, i32, i32) {
    %c0_i32 = arith.constant 0 : i32
    %c0_i32_0 = arith.constant 0 : i32
    %c0_i32_1 = arith.constant 0 : i32
    return %arg0, %c0_i32, %c0_i32_0 : i32, i32, i32
  }
}

</mosaic_0001>

<bundles_post_ra>
// kernel: tpu_custom_call.1
= control target key start
LH: loop header
LB: loop body
LE: loop exit
PB: predicated region body
PF: predicated region fallthrough
CT: control target
= control target key end

     0   :  { %13 = vsyncpa [#allocation3], 0  ;;  %s3511_s0 = inlined_call_operand.vmem [shape: f32[2,16,256], index: 0, kind: input, shape index: {}]   ;;  %s3512_s1 = inlined_call_operand.hbm [shape: f32[9,64,256], index: 1, kind: input, shape index: {}]   ;;  %s3513_s2 = inlined_call_operand.vmem [shape: bf16[64,16], index: 2, kind: input, shape index: {}]   ;;  %s3514_s3 = inlined_call_operand.vmem [shape: f32[64,4], index: 3, kind: input, shape index: {}]   ;;  %s3515_s4 = inlined_call_operand.vmem [shape: f32[64,16], index: 4, kind: input, shape index: {}]   ;;  %s3516_s5 = inlined_call_operand.vmem [shape: f32[1,16], index: 5, kind: input, shape index: {}]   ;;  %s3517_s6 = inlined_call_operand.vmem [shape: f32[64,16], index: 6, kind: input, shape index: {}]   ;;  %s3518_s7 = inlined_call_operand.vmem [shape: bf16[16,64], index: 7, kind: input, shape index: {}]   ;;  %s3519_s8 = inlined_call_operand.hbm [shape: f32[2,16,256], index: 8, kind: output, shape index: {}]  }
   0x1   :  { %14 = vsyncpa [#allocation4], 0 }
   0x2   :  { %16 = vsyncpa [#allocation4 + $0x1], 0  ;;  %s2165_s27 = smov 0   ;;  %s2167_s28 = smov 0  }
   0x3   :  { %s2169_s29 = smov 0   ;;  %s2171_s30 = smov 0  }
   0x4 LB: > { %s2186_s9 = sadd.s32 4294967295, %s2101_s30   ;;  %s1892_s10 = sadd.s32 4294967294, %s2101_s30   ;;  %s2101_s30 = sphi %s2171_s30, %s3642_s30   ;;  %s2097_s29 = sphi %s2169_s29, %s3641_s29   ;;  %s2093_s28 = sphi %s2167_s28, %s3640_s28   ;;  %s2089_s27 = sphi %s2165_s27, %s3639_s27  }
   0x5   : > { %s2190_s11 = sadd.s32 1, %s2101_s30   ;;  %s202_s12 = sadd.s32 1, %s2097_s29 }
   0x6   : > { %s199_s13 = ssub.s32 %s2101_s30, %s2190_s11  ;;  %p212_p0 = scmp.ne.s32.totalorder %s2097_s29, %s2093_s28 }
   0x7   : > { %p200_p1 = scmp.eq.s32.totalorder %s199_s13, 0  ;;  %p213_p2 = scmp.eq.s32.totalorder %s2186_s9, 1 }
   0x8   : > { %p218_p3 = scmp.ne.s32.totalorder %s2093_s28, %s2089_s27  ;;  %p219_p4 = scmp.eq.s32.totalorder %s1892_s10, 1 }
   0x9   : > { %s2201_s14 = scalar_select %p200_p1, %s2097_s29, %s202_s12  }
   0xa   : > { %p2203_p5 = por %p213_p2, %p212_p0  ;;  %p2207_p6 = por %p219_p4, %p218_p3 }
   0xb   : > { %p1893_p7 = scmp.ge.s32.totalorder %s2101_s30, 1  ;;  %p226_p8 = scmp.lt.s32.totalorder %s2101_s30, 3 }
   0xc   : > { %s3560_s16 = scalar_select %p2207_p6, 1, 0 }
   0xd   : > { %p1932_p9 = scmp.eq.s32.totalorder %s2186_s9, 0  ;;  %p2214_p10 = pnand %p1893_p7, %p226_p8 }
   0xe   : > { %s2103_s18 = smov [#allocation2]  }
   0xf   : > { %s238_s19 = sshll.u32 %s2103_s18, 4  ;;  %p1924_p11 = pneg %p2214_p10  ;;  %s239_s19 = int_to_ptr.vmem [resolvable:$true] %s238_s19 }
  0x10   : > { %s2022_s20 = scalar_lea.vmem %s239_s19, 18432  ;;  %p2030_p3 = scmp.lt.s32.totalorder %s239_s19, %s239_s19 }
  0x11   : > { %p1925_p12 = pnand %p1932_p9, %p1924_p11  ;;  %p2023_p0 = scmp.ne.s32.totalorder %s239_s19, %s2022_s20 }
  0x12   : > { %p2031_p4 = scmp.lt.s32.totalorder %s2022_s20, %s2022_s20 }
  0x13   : > { %p2013_p13 = pneg %p1925_p12 }
  0x14   : > { %p2032_p6 = por %p2031_p4, %p2030_p3 }
  0x15   : > { %p2025_p1 = pnand %p2023_p0, %p2013_p13 }
  0x17   : > { %p2026_p2 = pneg %p2025_p1 }
  0x19   : > { %p2033_p7 = pnand %p2032_p6, %p2026_p2 }
  0x1b   : > { %2036 = shalt.err (!%p2033_p7)
}
  0x1c   : > { %s2104_s21 = smov 256   ;;  %s2105_s22 = smov 16  }
  0x1d   : > { %1927 = dma.hbm_to_vmem [thread:$0]  (!%p1925_p12), %s3512_s1, 18432, %s239_s19, [#allocation3], %s2104_s21, %s2104_s21, %s2105_s22  }
  0x1e   : > { %280 = sbr.rel (%p2214_p10) target bundleno = 1348 (0x544), region = 52 }
  0x23   : > { %2080 = dma.done.wait (%p1932_p9), [#allocation3], 18432  }
  0x24   : > { %2082 = vsyncadd (%p1932_p9), [#allocation3], 4294948864  ;;  %p314_p8 = scmp.lt.s32.totalorder %s2186_s9, 1  ;;  %v2106_v0 = vmov 0   ;;  %v1991_v7 = vld [vmem:[%s3513_s2] sm:$0xff]   ;;  %vm402_vm0 = vcmask 130048  }
  0x25   : > { %447 = vmatprep.mubr.bf16.mxu0 %v2106_v0  ;;  %1983 = vset.pattern.permute.xlu0 %v2106_v0  ;;  %v324_v8 = vld [vmem:[%s3514_s3] sm:$0xff]  ;;  %v326_v9 = vld [vmem:[%s3514_s3 + $0x10] sm:$0xff]  ;;  %v325_v10 = vld [vmem:[%s3514_s3 + $0x8] sm:$0xff]  ;;  %v2107_v18 = vmov 1   ;;  %s2108_s17 = smov 17   ;;  %s2109_s18 = smov 16  }
  0x26   : > { %s315_s25 = scalar_select %p314_p8, %s2186_s9, 1  ;;  %1984 = vset.pattern.permute.xlu1 %v2106_v0  ;;  %1785 = vmatprep.mubr.bf16.mxu1 %v2106_v0  ;;  %v327_v11 = vld [vmem:[%s3514_s3 + $0x18] sm:$0xff]  ;;  %v1992_v12 = vld [vmem:[%s3513_s2 + $0x8] sm:$0xff]   ;;  %v2264_v13 = vld [vmem:[%s3514_s3 + $0x20] sm:$0xff]  ;;  %vm1749_vm9 = vcmask 523264  }
  0x27   : > { %344 = vperm.xlu0 %1983, %v324_v8   ;;  %354 = vperm.xlu1 %1984, %v326_v9   ;;  %3562 = vst [vmem:[#allocation8_spill] sm:$0xff] %v2264_v13  ;;  %v329_v14 = vld [vmem:[%s3514_s3 + $0x28] sm:$0xff]  ;;  %v330_v15 = vld [vmem:[%s3514_s3 + $0x30] sm:$0xff]  ;;  %v331_v16 = vld [vmem:[%s3514_s3 + $0x38] sm:$0xff]  ;;  %s2110_s19 = smov 15   ;;  %s2111_s20 = smov 1  }
  0x28   : > { %s1916_s26 = sshll.u32 %s315_s25, 5  ;;  %v1993_v17 = vld [vmem:[%s3513_s2 + $0x10] sm:$0xff]   ;;  %v1994_v19 = vld [vmem:[%s3513_s2 + $0x18] sm:$0xff]   ;;  %s2112_s21 = smov 127  }
  0x29   : > { %s2236_s13 = scalar_lea.vmem %s3511_s0, %s1916_s26  ;;  %s2113_s22 = smov 113  }
  0x2a   : > { %v321_v1 = vld [vmem:[%s2236_s13 + $0x8] sm:$0xff]  ;;  %v323_v2 = vld [vmem:[%s2236_s13 + $0x18] sm:$0xff]  ;;  %v320_v3 = vld [vmem:[%s2236_s13] sm:$0xff]  ;;  %s2114_s23 = smov 112   ;;  %s2115_s24 = smov 111  }
  0x2b   : > { %v341_v4 = vpack.c.bf16 %v323_v2, %v321_v1  ;;  %v322_v5 = vld [vmem:[%s2236_s13 + $0x10] sm:$0xff]  ;;  %349 = vperm.xlu0 %1983, %v325_v10   ;;  %359 = vperm.xlu1 %1984, %v327_v11   ;;  %s311_s12 = sand.u32 1, %s2093_s28   ;;  %s2118_s26 = smov [#allocation5]  }
  0x2c   : > { %v340_v6 = vpack.c.bf16 %v322_v5, %v320_v3  ;;  %s3470_s25 = scalar_lea.sflag [#allocation4], %s311_s12  ;;  %s2041_s10 = sshll.u32 %s2118_s26, 4  ;;  %s2042_s10 = int_to_ptr.vmem [resolvable:$false] %s2041_s10 }
  0x2d   : > { %429 = vmatprep.subr.bf16.mxu0 %v341_v4 }
  0x2e   : > { %430 = vmatpush1.bf16.msra.mxu0 %v340_v6 }
  0x2f   : > { %364 = vperm.xlu0 %1983, %v2264_v13   ;;  %369 = vperm.xlu1 %1984, %v329_v14  }
  0x31   : > { %1905 = vmatmul.mubr.msk.bf16.vlgmr.msra.gmra.mxu0 %vm402_vm0, %v1991_v7 }
  0x32   : > { %457 = vmatprep.mubr.bf16.mxu0 %v2106_v0 }
  0x33   : > { %374 = vperm.xlu0 %1983, %v330_v15   ;;  %379 = vperm.xlu1 %1984, %v331_v16  }
  0x37   : > { %1985 = vset.pattern.permute.xlu0 %v2107_v18  ;;  %1986 = vset.pattern.permute.xlu1 %v2107_v18 }
  0x38   : > { %1387 = vperm.xlu0 %1985, %v324_v8   ;;  %1391 = vperm.xlu1 %1986, %v325_v10  }
  0x39   : > { %1906 = vmatmul.mubr.msk.bf16.gmra.mxu0 %vm402_vm0, %v1992_v12 }
  0x3a   : > { %467 = vmatprep.mubr.bf16.mxu0 %v2106_v0 }
  0x3c   : > { %1399 = vperm.xlu0 %1985, %v327_v11   ;;  %1395 = vperm.xlu1 %1986, %v326_v9  }
  0x41   : > { %1907 = vmatmul.mubr.msk.bf16.gmra.mxu0 %vm402_vm0, %v1993_v17 }
  0x42   : > { %477 = vmatprep.mubr.bf16.mxu0 %v2106_v0 }
  0x49   : > { %1908 = vmatmul.mubr.msk.bf16.gmra.mxu0 %vm402_vm0, %v1994_v19 }
  0xa2   : > { %v345_v20 = vpop.permute.xlu0 %344  ;;  %v355_v51 = vpop.permute.xlu1 %354 }
  0xa6   : > { %v350_v25 = vpop.permute.xlu0 %349  ;;  %v360_v2 = vpop.permute.xlu1 %359 }
  0xaa   : > { %v365_v12 = vpop.permute.xlu0 %364  ;;  %v2393_v16 = vpop.permute.xlu1 %369 }
  0xae   : > { %v2399_v17 = vpop.permute.xlu0 %374 }
  0xf1   : > { %v449_v21 = vpop.f32.mrf.mxu0 }
  0xf2   : > { %v450_v22 = vadd.f32 %v449_v21, %v345_v20  ;;  %v2409_v21 = vpop.permute.xlu0 %1387 }
  0xf3   : > { %v451_v23 = vpop.f32.mrf.mxu0  ;;  %3565 = vst [vmem:[#allocation11_spill] sm:$0xff] %v2409_v21 }
  0xf4   : > { %v488_v24 = vadd.f32 3.0, %v450_v22  ;;  %v452_v37 = vadd.f32 %v451_v23, %v345_v20  ;;  %v2407_v20 = vpop.permute.xlu1 %379 }
  0xf5   : > { %v453_v26 = vpop.f32.mrf.mxu0 }
  0xf6   : > { %v504_v27 = vmax.f32 %v488_v24, 0.0  ;;  %v454_v28 = vadd.f32 %v453_v26, %v350_v25  ;;  %v489_v39 = vadd.f32 3.0, %v452_v37 }
  0xf7   : > { %v455_v38 = vpop.f32.mrf.mxu0 }
  0xf8   : > { %v520_v29 = vmin.f32 %v504_v27, 6.0  ;;  %v490_v30 = vadd.f32 3.0, %v454_v28  ;;  %v456_v40 = vadd.f32 %v455_v38, %v350_v25  ;;  %v505_v41 = vmax.f32 %v489_v39, 0.0  ;;  %v2415_v24 = vpop.permute.xlu1 %1391  ;;  %v2421_v25 = vpop.permute.xlu0 %1399 }
  0xf9   : > { %v459_v50 = vpop.f32.mrf.mxu0  ;;  %3566 = vst [vmem:[#allocation12_spill] sm:$0xff] %v2415_v24  ;;  %3567 = vst [vmem:[#allocation13_spill] sm:$0xff] %v2421_v25 }
  0xfa   : > { %v536_v31 = vmul.f32 %v520_v29, %v450_v22  ;;  %v506_v32 = vmax.f32 %v490_v30, 0.0  ;;  %v491_v42 = vadd.f32 3.0, %v456_v40  ;;  %v521_v43 = vmin.f32 %v505_v41, 6.0 }
  0xfb   : > { %v460_v52 = vadd.f32 %v459_v50, %v355_v51  ;;  %v461_v54 = vpop.f32.mrf.mxu0 }
  0xfc   : > { %v2285_v33 = vmul.f32 0.16666667, %v536_v31  ;;  %v522_v34 = vmin.f32 %v506_v32, 6.0  ;;  %v507_v44 = vmax.f32 %v491_v42, 0.0  ;;  %v537_v45 = vmul.f32 %v521_v43, %v452_v37 }
  0xfd   : > { %v492_v53 = vadd.f32 3.0, %v460_v52  ;;  %v462_v55 = vadd.f32 %v461_v54, %v355_v51  ;;  %v463_v1 = vpop.f32.mrf.mxu0 }
  0xfe   : > { %v538_v35 = vmul.f32 %v522_v34, %v454_v28  ;;  %568 = vrot.lane.b32.xlu0 %v2285_v33, %s2108_s17  ;;  %v523_v46 = vmin.f32 %v507_v44, 6.0  ;;  %v2319_v47 = vmul.f32 0.16666667, %v537_v45  ;;  %v464_v3 = vadd.f32 %v463_v1, %v360_v2  ;;  %v2427_v28 = vpop.permute.xlu1 %1395 }
  0xff   : > { %v508_v56 = vmax.f32 %v492_v53, 0.0  ;;  %v493_v57 = vadd.f32 3.0, %v462_v55  ;;  %v465_v5 = vpop.f32.mrf.mxu0  ;;  %3568 = vst [vmem:[#allocation14_spill] sm:$0xff] %v2427_v28 }
 0x100   : > { %v2289_v36 = vmul.f32 0.16666667, %v538_v35  ;;  %v539_v48 = vmul.f32 %v523_v46, %v456_v40  ;;  %v494_v4 = vadd.f32 3.0, %v464_v3  ;;  %v466_v6 = vadd.f32 %v465_v5, %v360_v2 }
 0x101   : > { %v524_v58 = vmin.f32 %v508_v56, 6.0  ;;  %v509_v59 = vmax.f32 %v493_v57, 0.0  ;;  %v469_v22 = vpop.f32.mrf.mxu0 }
 0x102   : > { %570 = vrot.lane.b32.xlu1 %v2289_v36, %s2108_s17  ;;  %651 = vrot.lane.b32.xlu0 %v2285_v33, %s2109_s18  ;;  %v2325_v49 = vmul.f32 0.16666667, %v539_v48  ;;  %v510_v7 = vmax.f32 %v494_v4, 0.0  ;;  %v495_v8 = vadd.f32 3.0, %v466_v6  ;;  %v470_v23 = vadd.f32 %v469_v22, %v365_v12 }
 0x103   : > { %v540_v60 = vmul.f32 %v524_v58, %v460_v52  ;;  %v525_v61 = vmin.f32 %v509_v59, 6.0  ;;  %v471_v27 = vpop.f32.mrf.mxu0 }
 0x104   : > { %v526_v9 = vmin.f32 %v510_v7, 6.0  ;;  %v511_v10 = vmax.f32 %v495_v8, 0.0  ;;  %v496_v26 = vadd.f32 3.0, %v470_v23  ;;  %v472_v30 = vadd.f32 %v471_v27, %v365_v12 }
 0x105   : > { %v2355_v62 = vmul.f32 0.16666667, %v540_v60  ;;  %v541_v63 = vmul.f32 %v525_v61, %v462_v55  ;;  %v473_v51 = vpop.f32.mrf.mxu0 }
 0x106   : > { %653 = vrot.lane.b32.xlu1 %v2289_v36, %s2109_s18  ;;  %749 = vrot.lane.b32.xlu0 %v2285_v33, %s2110_s19  ;;  %v542_v11 = vmul.f32 %v526_v9, %v464_v3  ;;  %v527_v14 = vmin.f32 %v511_v10, 6.0  ;;  %v512_v29 = vmax.f32 %v496_v26, 0.0  ;;  %v497_v34 = vadd.f32 3.0, %v472_v30 }
 0x107   : > { %v2365_v0 = vmul.f32 0.16666667, %v541_v63  ;;  %v474_v55 = vadd.f32 %v473_v51, %v2393_v16  ;;  %v475_v63 = vpop.f32.mrf.mxu0 }
 0x108   : > { %v2391_v15 = vmul.f32 0.16666667, %v542_v11  ;;  %v543_v18 = vmul.f32 %v527_v14, %v466_v6  ;;  %v528_v32 = vmin.f32 %v512_v29, 6.0  ;;  %v513_v39 = vmax.f32 %v497_v34, 0.0 }
 0x109   : > { %v498_v58 = vadd.f32 3.0, %v474_v55  ;;  %v476_v1 = vadd.f32 %v475_v63, %v2393_v16  ;;  %v479_v14 = vpop.f32.mrf.mxu0 }
 0x10a   : > { %751 = vrot.lane.b32.xlu1 %v2289_v36, %s2110_s19  ;;  %847 = vrot.lane.b32.xlu0 %v2285_v33, %s2111_s20  ;;  %3563 = vst [vmem:[#allocation9_spill] sm:$0xff] %v2391_v15  ;;  %v2405_v19 = vmul.f32 0.16666667, %v543_v18  ;;  %v544_v38 = vmul.f32 %v528_v32, %v470_v23  ;;  %v529_v43 = vmin.f32 %v513_v39, 6.0  ;;  %v480_v23 = vadd.f32 %v479_v14, %v2399_v17 }
 0x10b   : > { %v514_v61 = vmax.f32 %v498_v58, 0.0  ;;  %v499_v5 = vadd.f32 3.0, %v476_v1 }
 0x10c   : > { %3564 = vst [vmem:[#allocation10_spill] sm:$0xff] %v2405_v19  ;;  %v2451_v42 = vmul.f32 0.16666667, %v544_v38  ;;  %v545_v46 = vmul.f32 %v529_v43, %v472_v30  ;;  %v500_v30 = vadd.f32 3.0, %v480_v23  ;;  %v481_v43 = vpop.f32.mrf.mxu0 }
 0x10d   : > { %v530_v4 = vmin.f32 %v514_v61, 6.0  ;;  %v515_v9 = vmax.f32 %v499_v5, 0.0 }
 0x10e   : > { %849 = vrot.lane.b32.xlu1 %v2289_v36, %s2111_s20  ;;  %994 = vrot.lane.b32.xlu0 %v2285_v33, %s2112_s21  ;;  %3569 = vst [vmem:[#allocation15_spill] sm:$0xff] %v2451_v42  ;;  %v2469_v52 = vmul.f32 0.16666667, %v545_v46  ;;  %v516_v39 = vmax.f32 %v500_v30, 0.0  ;;  %v482_v46 = vadd.f32 %v481_v43, %v2399_v17  ;;  %v483_v14 = vpop.f32.mrf.mxu0 }
 0x10f   : > { %v546_v8 = vmul.f32 %v530_v4, %v474_v55  ;;  %v531_v16 = vmin.f32 %v515_v9, 6.0  ;;  %v484_v30 = vadd.f32 %v483_v14, %v2407_v20 }
 0x110   : > { %v532_v58 = vmin.f32 %v516_v39, 6.0  ;;  %v501_v61 = vadd.f32 3.0, %v482_v46  ;;  %v485_v39 = vpop.f32.mrf.mxu0 }
 0x111   : > { %v2517_v12 = vmul.f32 0.16666667, %v546_v8  ;;  %v547_v26 = vmul.f32 %v531_v16, %v476_v1 }
 0x112   : > { %996 = vrot.lane.b32.xlu1 %v2289_v36, %s2112_s21  ;;  %1092 = vrot.lane.b32.xlu0 %v2285_v33, %s2113_s22  ;;  %v548_v4 = vmul.f32 %v532_v58, %v480_v23  ;;  %v517_v17 = vmax.f32 %v501_v61, 0.0 }
 0x113   : > { %3573 = vst [vmem:[#allocation19_spill] sm:$0xff] %v2517_v12  ;;  %v2540_v32 = vmul.f32 0.16666667, %v547_v26 }
 0x114   : > { %v2571_v9 = vmul.f32 0.16666667, %v548_v4  ;;  %v533_v16 = vmin.f32 %v517_v17, 6.0  ;;  %v502_v4 = vadd.f32 3.0, %v484_v30  ;;  %v486_v17 = vadd.f32 %v485_v39, %v2407_v20 }
 0x115   : > { %v3529_v20 = vlaneseq }
 0x116   : > { %1094 = vrot.lane.b32.xlu1 %v2289_v36, %s2113_s22  ;;  %1190 = vrot.lane.b32.xlu0 %v2285_v33, %s2114_s23  ;;  %3577 = vst [vmem:[#allocation23_spill] sm:$0xff] %v2571_v9  ;;  %v549_v43 = vmul.f32 %v533_v16, %v482_v46  ;;  %v518_v46 = vmax.f32 %v502_v4, 0.0  ;;  %v503_v16 = vadd.f32 3.0, %v486_v17 }
 0x117   : > { %v2614_v4 = vand.u32 127, %v3529_v20 }
 0x118   : > { %v2595_v14 = vmul.f32 0.16666667, %v549_v43  ;;  %v534_v24 = vmin.f32 %v518_v46, 6.0  ;;  %v519_v43 = vmax.f32 %v503_v16, 0.0 }
 0x119   : > { %vm602_vm1 = vcmp.lt.s32.totalorder %v2614_v4, 17  ;;  %vm683_vm2 = vcmp.lt.s32.totalorder %v2614_v4, 16  ;;  %vm781_vm3 = vcmp.lt.s32.totalorder %v2614_v4, 15  ;;  %vm879_vm4 = vcmp.lt.s32.totalorder %v2614_v4, 1 }
 0x11a   : > { %1192 = vrot.lane.b32.xlu1 %v2289_v36, %s2114_s23  ;;  %1288 = vrot.lane.b32.xlu0 %v2285_v33, %s2115_s24  ;;  %3580 = vst [vmem:[#allocation26_spill] sm:$0xff] %v2595_v14  ;;  %vm1026_vm5 = vcmp.lt.s32.totalorder %v2614_v4, 127  ;;  %vm1124_vm6 = vcmp.lt.s32.totalorder %v2614_v4, 113  ;;  %vm1222_vm7 = vcmp.lt.s32.totalorder %v2614_v4, 112  ;;  %vm1320_vm8 = vcmp.lt.s32.totalorder %v2614_v4, 111 }
 0x11e   : > { %1290 = vrot.lane.b32.xlu1 %v2289_v36, %s2115_s24  ;;  %584 = vrot.lane.b32.xlu0 %v2319_v47, %s2108_s17 }
 0x122   : > { %586 = vrot.lane.b32.xlu1 %v2325_v49, %s2108_s17  ;;  %667 = vrot.lane.b32.xlu0 %v2319_v47, %s2109_s18 }
 0x126   : > { %669 = vrot.lane.b32.xlu1 %v2325_v49, %s2109_s18  ;;  %765 = vrot.lane.b32.xlu0 %v2319_v47, %s2110_s19 }
 0x12a   : > { %767 = vrot.lane.b32.xlu1 %v2325_v49, %s2110_s19  ;;  %863 = vrot.lane.b32.xlu0 %v2319_v47, %s2111_s20 }
 0x12e   : > { %865 = vrot.lane.b32.xlu1 %v2325_v49, %s2111_s20  ;;  %1010 = vrot.lane.b32.xlu0 %v2319_v47, %s2112_s21 }
 0x132   : > { %1012 = vrot.lane.b32.xlu1 %v2325_v49, %s2112_s21  ;;  %1108 = vrot.lane.b32.xlu0 %v2319_v47, %s2113_s22 }
 0x136   : > { %1110 = vrot.lane.b32.xlu1 %v2325_v49, %s2113_s22  ;;  %1206 = vrot.lane.b32.xlu0 %v2319_v47, %s2114_s23 }
 0x13a   : > { %1208 = vrot.lane.b32.xlu1 %v2325_v49, %s2114_s23  ;;  %1304 = vrot.lane.b32.xlu0 %v2319_v47, %s2115_s24 }
 0x13e   : > { %1306 = vrot.lane.b32.xlu1 %v2325_v49, %s2115_s24  ;;  %572 = vrot.lane.b32.xlu0 %v2355_v62, %s2108_s17 }
 0x142   : > { %1292 = vrot.lane.b32.xlu1 %v2355_v62, %s2115_s24  ;;  %655 = vrot.lane.b32.xlu0 %v2355_v62, %s2109_s18 }
 0x146   : > { %588 = vrot.lane.b32.xlu1 %v2365_v0, %s2108_s17  ;;  %753 = vrot.lane.b32.xlu0 %v2355_v62, %s2110_s19 }
 0x14a   : > { %671 = vrot.lane.b32.xlu1 %v2365_v0, %s2109_s18  ;;  %851 = vrot.lane.b32.xlu0 %v2355_v62, %s2111_s20 }
 0x14e   : > { %769 = vrot.lane.b32.xlu1 %v2365_v0, %s2110_s19  ;;  %998 = vrot.lane.b32.xlu0 %v2355_v62, %s2112_s21 }
 0x152   : > { %867 = vrot.lane.b32.xlu1 %v2365_v0, %s2111_s20  ;;  %1096 = vrot.lane.b32.xlu0 %v2355_v62, %s2113_s22 }
 0x156   : > { %1014 = vrot.lane.b32.xlu1 %v2365_v0, %s2112_s21  ;;  %1194 = vrot.lane.b32.xlu0 %v2355_v62, %s2114_s23 }
 0x15a   : > { %1112 = vrot.lane.b32.xlu1 %v2365_v0, %s2113_s22  ;;  %1308 = vrot.lane.b32.xlu0 %v2365_v0, %s2115_s24 }
 0x15e   : > { %1210 = vrot.lane.b32.xlu1 %v2365_v0, %s2114_s23  ;;  %574 = vrot.lane.b32.xlu0 %v2391_v15, %s2108_s17 }
 0x162   : > { %1196 = vrot.lane.b32.xlu1 %v2391_v15, %s2114_s23  ;;  %657 = vrot.lane.b32.xlu0 %v2391_v15, %s2109_s18 }
 0x166   : > { %590 = vrot.lane.b32.xlu1 %v2405_v19, %s2108_s17  ;;  %755 = vrot.lane.b32.xlu0 %v2391_v15, %s2110_s19 }
 0x16a   : > { %673 = vrot.lane.b32.xlu1 %v2405_v19, %s2109_s18  ;;  %853 = vrot.lane.b32.xlu0 %v2391_v15, %s2111_s20 }
 0x16e   : > { %771 = vrot.lane.b32.xlu1 %v2405_v19, %s2110_s19  ;;  %1000 = vrot.lane.b32.xlu0 %v2391_v15, %s2112_s21 }
 0x170   : > { %v2429_v31 = vpop.permute.xlu0 %568 }
 0x172   : > { %869 = vrot.lane.b32.xlu1 %v2405_v19, %s2111_s20  ;;  %1098 = vrot.lane.b32.xlu0 %v2391_v15, %s2113_s22 }
 0x174   : > { %v2435_v35 = vpop.permute.xlu1 %570  ;;  %v2437_v37 = vpop.permute.xlu0 %651 }
 0x176   : > { %1016 = vrot.lane.b32.xlu1 %v2405_v19, %s2112_s21  ;;  %1294 = vrot.lane.b32.xlu0 %v2391_v15, %s2115_s24  ;;  %v703_v15 = vld [vmem:[#allocation2 + $0x90] sm:$0xff] }
 0x178   : > { %v2443_v40 = vpop.permute.xlu1 %653  ;;  %v2445_v41 = vpop.permute.xlu0 %749 }
 0x17a   : > { %1114 = vrot.lane.b32.xlu1 %v2405_v19, %s2113_s22  ;;  %1212 = vrot.lane.b32.xlu0 %v2405_v19, %s2114_s23 }
 0x17c   : > { %v2453_v44 = vpop.permute.xlu1 %751  ;;  %v2455_v45 = vpop.permute.xlu0 %847 }
 0x17e   : > { %1310 = vrot.lane.b32.xlu1 %v2405_v19, %s2115_s24  ;;  %576 = vrot.lane.b32.xlu0 %v2451_v42, %s2108_s17 }
 0x180   : > { %v2461_v48 = vpop.permute.xlu1 %849  ;;  %v2463_v50 = vpop.permute.xlu0 %994 }
 0x182   : > { %1100 = vrot.lane.b32.xlu1 %v2451_v42, %s2113_s22  ;;  %659 = vrot.lane.b32.xlu0 %v2451_v42, %s2109_s18 }
 0x184   : > { %v2471_v53 = vpop.permute.xlu1 %996  ;;  %v2473_v54 = vpop.permute.xlu0 %1092 }
 0x186   : > { %592 = vrot.lane.b32.xlu1 %v2469_v52, %s2108_s17  ;;  %757 = vrot.lane.b32.xlu0 %v2451_v42, %s2110_s19 }
 0x188   : > { %v2480_v56 = vpop.permute.xlu1 %1094  ;;  %v2482_v57 = vpop.permute.xlu0 %1190 }
 0x18a   : > { %675 = vrot.lane.b32.xlu1 %v2469_v52, %s2109_s18  ;;  %855 = vrot.lane.b32.xlu0 %v2451_v42, %s2111_s20 }
 0x18c   : > { %v2488_v59 = vpop.permute.xlu1 %1192  ;;  %v2490_v60 = vpop.permute.xlu0 %1288 }
 0x18d   : > { %3570 = vst [vmem:[#allocation16_spill] sm:$0xff] %v2488_v59  ;;  %3571 = vst [vmem:[#allocation17_spill] sm:$0xff] %v2490_v60  ;;  %v801_v60 = vld [vmem:[#allocation2 + $0x110] sm:$0xff] }
 0x18e   : > { %773 = vrot.lane.b32.xlu1 %v2469_v52, %s2110_s19  ;;  %1002 = vrot.lane.b32.xlu0 %v2451_v42, %s2112_s21 }
 0x190   : > { %v2497_v2 = vpop.permute.xlu1 %1290  ;;  %v2499_v3 = vpop.permute.xlu0 %584 }
 0x191   : > { %3572 = vst [vmem:[#allocation18_spill] sm:$0xff] %v2497_v2 }
 0x192   : > { %871 = vrot.lane.b32.xlu1 %v2469_v52, %s2111_s20  ;;  %1198 = vrot.lane.b32.xlu0 %v2451_v42, %s2114_s23 }
 0x194   : > { %v2505_v6 = vpop.permute.xlu1 %586  ;;  %v2507_v7 = vpop.permute.xlu0 %667 }
 0x195   : > { %v684_v19 = vsel %vm683_vm2, %v2437_v37, %v2507_v7 }
 0x196   : > { %1018 = vrot.lane.b32.xlu1 %v2469_v52, %s2112_s21  ;;  %1116 = vrot.lane.b32.xlu0 %v2469_v52, %s2113_s22 }
 0x198   : > { %v2513_v10 = vpop.permute.xlu1 %669  ;;  %v2515_v11 = vpop.permute.xlu0 %765 }
 0x19a   : > { %1214 = vrot.lane.b32.xlu1 %v2469_v52, %s2114_s23  ;;  %578 = vrot.lane.b32.xlu0 %v2517_v12, %s2108_s17 }
 0x19c   : > { %v2523_v18 = vpop.permute.xlu1 %767  ;;  %v2525_v22 = vpop.permute.xlu0 %863 }
 0x19e   : > { %1004 = vrot.lane.b32.xlu1 %v2517_v12, %s2112_s21  ;;  %661 = vrot.lane.b32.xlu0 %v2517_v12, %s2109_s18 }
 0x1a0   : > { %v2532_v27 = vpop.permute.xlu1 %865  ;;  %v2534_v29 = vpop.permute.xlu0 %1010 }
 0x1a2   : > { %1200 = vrot.lane.b32.xlu1 %v2517_v12, %s2114_s23  ;;  %759 = vrot.lane.b32.xlu0 %v2517_v12, %s2110_s19 }
 0x1a4   : > { %v2542_v34 = vpop.permute.xlu1 %1012  ;;  %v2544_v38 = vpop.permute.xlu0 %1108 }
 0x1a6   : > { %594 = vrot.lane.b32.xlu1 %v2540_v32, %s2108_s17  ;;  %857 = vrot.lane.b32.xlu0 %v2517_v12, %s2111_s20 }
 0x1a8   : > { %v2551_v51 = vpop.permute.xlu1 %1110  ;;  %v2553_v55 = vpop.permute.xlu0 %1206 }
 0x1aa   : > { %677 = vrot.lane.b32.xlu1 %v2540_v32, %s2109_s18  ;;  %1102 = vrot.lane.b32.xlu0 %v2517_v12, %s2113_s22  ;;  %v535_v12 = vmin.f32 %v519_v43, 6.0  ;;  %v603_v43 = vsel %vm602_vm1, %v2429_v31, %v2499_v3 }
 0x1ac   : > { %v2559_v63 = vpop.permute.xlu1 %1208  ;;  %v2561_v1 = vpop.permute.xlu0 %1304 }
 0x1ad   : > { %3574 = vst [vmem:[#allocation20_spill] sm:$0xff] %v2559_v63  ;;  %3575 = vst [vmem:[#allocation21_spill] sm:$0xff] %v2561_v1  ;;  %v791_v1 = vsel %vm781_vm3, %v2523_v18, %v2453_v44 }
 0x1ae   : > { %775 = vrot.lane.b32.xlu1 %v2540_v32, %s2110_s19  ;;  %1020 = vrot.lane.b32.xlu0 %v2540_v32, %s2112_s21 }
 0x1b0   : > { %v2567_v5 = vpop.permute.xlu1 %1306  ;;  %v2569_v8 = vpop.permute.xlu0 %572 }
 0x1b1   : > { %3576 = vst [vmem:[#allocation22_spill] sm:$0xff] %v2567_v5  ;;  %v550_v5 = vmul.f32 %v534_v24, %v484_v30  ;;  %v619_v24 = vld [vmem:[#allocation2] sm:$0xff]  ;;  %v620_v30 = vld [vmem:[#allocation2 + $0x8] sm:$0xff] }
 0x1b2   : > { %873 = vrot.lane.b32.xlu1 %v2540_v32, %s2111_s20  ;;  %580 = vrot.lane.b32.xlu0 %v2571_v9, %s2108_s17 }
 0x1b3   : > { %v2629_v20 = vmul.f32 0.16666667, %v550_v5 }
 0x1b4   : > { %v2577_v23 = vpop.permute.xlu1 %1292  ;;  %v2579_v26 = vpop.permute.xlu0 %655 }
 0x1b5   : > { %3578 = vst [vmem:[#allocation24_spill] sm:$0xff] %v2577_v23 }
 0x1b6   : > { %1118 = vrot.lane.b32.xlu1 %v2540_v32, %s2113_s22  ;;  %663 = vrot.lane.b32.xlu0 %v2571_v9, %s2109_s18 }
 0x1b8   : > { %v2586_v58 = vpop.permute.xlu1 %588  ;;  %v2588_v61 = vpop.permute.xlu0 %753 }
 0x1b9   : > { %3579 = vst [vmem:[#allocation25_spill] sm:$0xff] %v2588_v61 }
 0x1ba   : > { %1104 = vrot.lane.b32.xlu1 %v2571_v9, %s2113_s22  ;;  %761 = vrot.lane.b32.xlu0 %v2571_v9, %s2110_s19 }
 0x1bc   : > { %v2597_v25 = vpop.permute.xlu1 %671  ;;  %v2599_v21 = vpop.permute.xlu0 %851 }
 0x1bd   : > { %3581 = vst [vmem:[#allocation27_spill] sm:$0xff] %v2599_v21 }
 0x1be   : > { %596 = vrot.lane.b32.xlu1 %v2595_v14, %s2108_s17  ;;  %859 = vrot.lane.b32.xlu0 %v2571_v9, %s2111_s20 }
 0x1c0   : > { %v2605_v39 = vpop.permute.xlu1 %769  ;;  %v2607_v28 = vpop.permute.xlu0 %998 }
 0x1c1   : > { %3582 = vst [vmem:[#allocation28_spill] sm:$0xff] %v2605_v39  ;;  %3583 = vst [vmem:[#allocation29_spill] sm:$0xff] %v2607_v28  ;;  %v551_v28 = vmul.f32 %v535_v12, %v486_v17 }
 0x1c2   : > { %679 = vrot.lane.b32.xlu1 %v2595_v14, %s2109_s18  ;;  %1006 = vrot.lane.b32.xlu0 %v2571_v9, %s2112_s21  ;;  %v693_v9 = vsel %vm683_vm2, %v2513_v10, %v2443_v40 }
 0x1c3   : > { %v2649_v17 = vmul.f32 0.16666667, %v551_v28  ;;  %v685_v28 = vsel %vm683_vm2, %v2443_v40, %v2513_v10  ;;  %v782_v40 = vsel %vm781_vm3, %v2445_v41, %v2515_v11  ;;  %v790_v10 = vsel %vm781_vm3, %v2515_v11, %v2445_v41 }
 0x1c4   : > { %v2616_v23 = vpop.permute.xlu1 %867  ;;  %v2618_v2 = vpop.permute.xlu0 %1096  ;;  %v719_v11 = vmul.f32 %v703_v15, %v693_v9  ;;  %v881_v15 = vsel %vm879_vm4, %v2461_v48, %v2532_v27  ;;  %v889_v9 = vsel %vm879_vm4, %v2532_v27, %v2461_v48 }
 0x1c5   : > { %3584 = vst [vmem:[#allocation30_spill] sm:$0xff] %v2616_v23  ;;  %3585 = vst [vmem:[#allocation31_spill] sm:$0xff] %v2618_v2  ;;  %v701_v2 = vld [vmem:[#allocation2 + $0x80] sm:$0xff] }
 0x1c6   : > { %777 = vrot.lane.b32.xlu1 %v2595_v14, %s2110_s19  ;;  %1120 = vrot.lane.b32.xlu0 %v2595_v14, %s2113_s22 }
 0x1c8   : > { %v2625_v46 = vpop.permute.xlu1 %1014  ;;  %v2627_v16 = vpop.permute.xlu0 %1194 }
 0x1c9   : > { %3586 = vst [vmem:[#allocation32_spill] sm:$0xff] %v2625_v46  ;;  %3587 = vst [vmem:[#allocation33_spill] sm:$0xff] %v2627_v16  ;;  %v611_v16 = vsel %vm602_vm1, %v2499_v3, %v2429_v31  ;;  %v702_v46 = vld [vmem:[#allocation2 + $0x88] sm:$0xff]  ;;  %v692_v31 = vsel %vm683_vm2, %v2507_v7, %v2437_v37  ;;  %v621_v37 = vld [vmem:[#allocation2 + $0x10] sm:$0xff]  ;;  %v604_v7 = vsel %vm602_vm1, %v2435_v35, %v2505_v6 }
 0x1ca   : > { %875 = vrot.lane.b32.xlu1 %v2595_v14, %s2111_s20  ;;  %582 = vrot.lane.b32.xlu0 %v2629_v20, %s2108_s17  ;;  %v635_v3 = vmul.f32 %v619_v24, %v611_v16  ;;  %v612_v16 = vsel %vm602_vm1, %v2505_v6, %v2435_v35  ;;  %v799_v24 = vld [vmem:[#allocation2 + $0x100] sm:$0xff]  ;;  %v718_v13 = vmul.f32 %v702_v46, %v684_v19  ;;  %v802_v35 = vld [vmem:[#allocation2 + $0x118] sm:$0xff]  ;;  %v898_v19 = vld [vmem:[#allocation2 + $0x188] sm:$0xff] }
 0x1cb   : > { %v783_v6 = vsel %vm781_vm3, %v2453_v44, %v2523_v18  ;;  %v880_v46 = vsel %vm879_vm4, %v2455_v45, %v2525_v22  ;;  %v815_v23 = vmul.f32 %v799_v24, %v790_v10  ;;  %v899_v18 = vld [vmem:[#allocation2 + $0x190] sm:$0xff] }
 0x1cc   : > { %v2645_v12 = vpop.permute.xlu1 %1112  ;;  %v2647_v5 = vpop.permute.xlu0 %1308  ;;  %v914_v10 = vmul.f32 %v898_v19, %v880_v46  ;;  %v915_v27 = vmul.f32 %v899_v18, %v889_v9  ;;  %v1046_v19 = vld [vmem:[#allocation2 + $0x290] sm:$0xff]  ;;  %v1047_v46 = vld [vmem:[#allocation2 + $0x298] sm:$0xff]  ;;  %v951_v9 = vld [vmem:[#allocation2 + $0x228] sm:$0xff] }
 0x1cd   : > { %3588 = vst [vmem:[#allocation34_spill] sm:$0xff] %v2645_v12  ;;  %3589 = vst [vmem:[#allocation35_spill] sm:$0xff] %v2647_v5  ;;  %v636_v12 = vmul.f32 %v620_v30, %v603_v43  ;;  %v704_v5 = vld [vmem:[#allocation2 + $0x98] sm:$0xff]  ;;  %v800_v30 = vld [vmem:[#allocation2 + $0x108] sm:$0xff] }
 0x1ce   : > { %1022 = vrot.lane.b32.xlu1 %v2595_v14, %s2112_s21  ;;  %665 = vrot.lane.b32.xlu0 %v2629_v20, %s2109_s18  ;;  %v622_v43 = vld [vmem:[#allocation2 + $0x18] sm:$0xff]  ;;  %v717_v14 = vmul.f32 %v701_v2, %v692_v31  ;;  %v720_v21 = vmul.f32 %v704_v5, %v685_v28  ;;  %v897_v2 = vld [vmem:[#allocation2 + $0x180] sm:$0xff]  ;;  %v888_v31 = vsel %vm879_vm4, %v2525_v22, %v2455_v45 }
 0x1cf   : > { %v816_v44 = vmul.f32 %v800_v30, %v782_v40  ;;  %v637_v5 = vmul.f32 %v621_v37, %v612_v16  ;;  %v638_v28 = vmul.f32 %v622_v43, %v604_v7  ;;  %v817_v45 = vmul.f32 %v801_v60, %v791_v1  ;;  %v948_v7 = vld [vmem:[#allocation2 + $0x210] sm:$0xff] }
 0x1d0   : > { %v2696_v42 = vpop.permute.xlu1 %1210  ;;  %v2698_v41 = vpop.permute.xlu0 %574  ;;  %v818_v22 = vmul.f32 %v802_v35, %v783_v6  ;;  %v733_v24 = vadd.f32 %v717_v14, %v635_v3  ;;  %v734_v30 = vadd.f32 %v718_v13, %v636_v12  ;;  %v913_v40 = vmul.f32 %v897_v2, %v888_v31  ;;  %v946_v13 = vld [vmem:[#allocation2 + $0x200] sm:$0xff]  ;;  %v947_v14 = vld [vmem:[#allocation2 + $0x208] sm:$0xff] }
 0x1d1   : > { %3590 = vst [vmem:[#allocation36_spill] sm:$0xff] %v2696_v42  ;;  %3591 = vst [vmem:[#allocation37_spill] sm:$0xff] %v2698_v41  ;;  %v900_v42 = vld [vmem:[#allocation2 + $0x198] sm:$0xff]  ;;  %v735_v63 = vadd.f32 %v719_v11, %v637_v5  ;;  %v736_v48 = vadd.f32 %v720_v21, %v638_v28  ;;  %v1044_v35 = vld [vmem:[#allocation2 + $0x280] sm:$0xff]  ;;  %v963_v11 = vmul.f32 %v947_v14, %v2319_v47 }
 0x1d2   : > { %861 = vrot.lane.b32.xlu1 %v2629_v20, %s2111_s20  ;;  %763 = vrot.lane.b32.xlu0 %v2629_v20, %s2110_s19  ;;  %v916_v61 = vmul.f32 %v900_v42, %v881_v15  ;;  %v831_v39 = vadd.f32 %v815_v23, %v733_v24  ;;  %v832_v37 = vadd.f32 %v816_v44, %v734_v30  ;;  %v949_v21 = vld [vmem:[#allocation2 + $0x218] sm:$0xff]  ;;  %v1045_v6 = vld [vmem:[#allocation2 + $0x288] sm:$0xff]  ;;  %v950_v15 = vld [vmem:[#allocation2 + $0x220] sm:$0xff] }
 0x1d3   : > { %v833_v60 = vadd.f32 %v817_v45, %v735_v63  ;;  %v834_v1 = vadd.f32 %v818_v22, %v736_v48  ;;  %v1027_v63 = vsel %vm1026_vm5, %v2463_v50, %v2534_v29  ;;  %v962_v2 = vmul.f32 %v946_v13, %v2285_v33  ;;  %v1142_v24 = vld [vmem:[#allocation2 + $0x300] sm:$0xff]  ;;  %v1143_v30 = vld [vmem:[#allocation2 + $0x308] sm:$0xff]  ;;  %v1145_v13 = vld [vmem:[#allocation2 + $0x318] sm:$0xff] }
 0x1d4   : > { %v2720_v41 = vpop.permute.xlu1 %1196  ;;  %v2722_v59 = vpop.permute.xlu0 %657  ;;  %v929_v12 = vadd.f32 %v913_v40, %v831_v39  ;;  %v930_v3 = vadd.f32 %v914_v10, %v832_v37  ;;  %v1035_v39 = vsel %vm1026_vm5, %v2534_v29, %v2463_v50  ;;  %v1036_v31 = vsel %vm1026_vm5, %v2542_v34, %v2471_v53  ;;  %v705_v14 = vld [vmem:[#allocation2 + $0xa0] sm:$0xff] }
 0x1d5   : > { %v931_v23 = vadd.f32 %v915_v27, %v833_v60  ;;  %v932_v43 = vadd.f32 %v916_v61, %v834_v1  ;;  %v1028_v61 = vsel %vm1026_vm5, %v2471_v53, %v2542_v34  ;;  %v965_v50 = vmul.f32 %v949_v21, %v2325_v49  ;;  %v1144_v1 = vld [vmem:[#allocation2 + $0x310] sm:$0xff] }
 0x1d6   : > { %1008 = vrot.lane.b32.xlu1 %v2629_v20, %s2112_s21  ;;  %877 = vrot.lane.b32.xlu0 %v2649_v17, %s2111_s20  ;;  %v964_v47 = vmul.f32 %v948_v7, %v2289_v36  ;;  %v979_v33 = vadd.f32 %v963_v11, %v930_v3  ;;  %v978_v29 = vadd.f32 %v962_v2, %v929_v12  ;;  %v706_v12 = vld [vmem:[#allocation2 + $0xa8] sm:$0xff] }
 0x1d7   : > { %v1060_v44 = vmul.f32 %v1044_v35, %v1027_v63  ;;  %v1061_v18 = vmul.f32 %v1045_v6, %v1035_v39  ;;  %v981_v34 = vadd.f32 %v965_v50, %v932_v43  ;;  %v1062_v49 = vmul.f32 %v1046_v19, %v1028_v61  ;;  %v623_v43 = vld [vmem:[#allocation2 + $0x20] sm:$0xff]  ;;  %v804_v63 = vld [vmem:[#allocation2 + $0x128] sm:$0xff] }
 0x1d8   : > { %v2729_v16 = vpop.permute.xlu1 %590  ;;  %v2731_v42 = vpop.permute.xlu0 %755  ;;  %v980_v28 = vadd.f32 %v964_v47, %v931_v23  ;;  %v1063_v45 = vmul.f32 %v1047_v46, %v1036_v31  ;;  %v2765_v36 = vmul.f32 %v950_v15, %v2355_v62  ;;  %v2768_v22 = vmul.f32 %v951_v9, %v2365_v0  ;;  %v803_v6 = vld [vmem:[#allocation2 + $0x120] sm:$0xff]  ;;  %v3593_v11 = vld [vmem:[#allocation25_spill] sm:$0xff]  ;;  %v3596_v9 = vld [vmem:[#allocation30_spill] sm:$0xff] }
 0x1d9   : > { %v1125_v40 = vsel %vm1124_vm6, %v2473_v54, %v2544_v38  ;;  %v1133_v10 = vsel %vm1124_vm6, %v2544_v38, %v2473_v54  ;;  %v1076_v48 = vadd.f32 %v1060_v44, %v978_v29  ;;  %v1077_v27 = vadd.f32 %v1061_v18, %v979_v33  ;;  %v3592_v39 = vld [vmem:[#allocation28_spill] sm:$0xff]  ;;  %v902_v15 = vld [vmem:[#allocation2 + $0x1a8] sm:$0xff] }
 0x1da   : > { %598 = vrot.lane.b32.xlu1 %v2649_v17, %s2108_s17  ;;  %1024 = vrot.lane.b32.xlu0 %v2649_v17, %s2112_s21  ;;  %v2786_v37 = vadd.f32 %v1062_v49, %v980_v28  ;;  %v2788_v60 = vadd.f32 %v1063_v45, %v981_v34  ;;  %v1126_v54 = vsel %vm1124_vm6, %v2480_v56, %v2551_v51  ;;  %v1240_v31 = vld [vmem:[#allocation2 + $0x380] sm:$0xff]  ;;  %v3597_v34 = vld [vmem:[#allocation27_spill] sm:$0xff]  ;;  %s1898_s17 = sshll.u32 %s311_s12, 5  ;;  %s1917_s21 = sshll.u32 %s2186_s9, 9 }
 0x1db   : > { %v1134_v38 = vsel %vm1124_vm6, %v2551_v51, %v2480_v56  ;;  %v686_v3 = vsel %vm683_vm2, %v2579_v26, %v2597_v25  ;;  %v694_v7 = vsel %vm683_vm2, %v2597_v25, %v2579_v26  ;;  %v1158_v21 = vmul.f32 %v1142_v24, %v1125_v40  ;;  %v624_v25 = vld [vmem:[#allocation2 + $0x28] sm:$0xff]  ;;  %v3594_v47 = vld [vmem:[#allocation20_spill] sm:$0xff]  ;;  %v3598_v45 = vld [vmem:[#allocation15_spill] sm:$0xff] }
 0x1dc   : > { %v2758_v5 = vpop.permute.xlu1 %673  ;;  %v2760_v53 = vpop.permute.xlu0 %853  ;;  %v1159_v23 = vmul.f32 %v1143_v30, %v1133_v10  ;;  %v1223_v56 = vsel %vm1222_vm7, %v2482_v57, %v2553_v55  ;;  %v1231_v51 = vsel %vm1222_vm7, %v2553_v55, %v2482_v57  ;;  %v605_v26 = vsel %vm602_vm1, %v2569_v8, %v2586_v58  ;;  %v3595_v33 = vld [vmem:[#allocation16_spill] sm:$0xff]  ;;  %v1242_v24 = vld [vmem:[#allocation2 + $0x390] sm:$0xff]  ;;  %v1243_v30 = vld [vmem:[#allocation2 + $0x398] sm:$0xff] }
 0x1dd   : > { %v613_v35 = vsel %vm602_vm1, %v2586_v58, %v2569_v8  ;;  %v784_v57 = vsel %vm781_vm3, %v3593_v11, %v3592_v39  ;;  %v792_v55 = vsel %vm781_vm3, %v3592_v39, %v3593_v11  ;;  %v1160_v46 = vmul.f32 %v1144_v1, %v1126_v54  ;;  %v1241_v8 = vld [vmem:[#allocation2 + $0x388] sm:$0xff]  ;;  %v901_v18 = vld [vmem:[#allocation2 + $0x1a0] sm:$0xff]  ;;  %v953_v11 = vld [vmem:[#allocation2 + $0x238] sm:$0xff] }
 0x1de   : > { %681 = vrot.lane.b32.xlu1 %v2649_v17, %s2109_s18  ;;  %1216 = vrot.lane.b32.xlu0 %v2540_v32, %s2114_s23  ;;  %v1161_v61 = vmul.f32 %v1145_v13, %v1134_v38  ;;  %v721_v58 = vmul.f32 %v705_v14, %v694_v7  ;;  %v722_v50 = vmul.f32 %v706_v12, %v686_v3  ;;  %v1338_v14 = vld [vmem:[#allocation2 + $0x400] sm:$0xff]  ;;  %v1339_v12 = vld [vmem:[#allocation2 + $0x408] sm:$0xff] }
 0x1df   : > { %v1224_v29 = vsel %vm1222_vm7, %v3595_v33, %v3594_v47  ;;  %v1232_v44 = vsel %vm1222_vm7, %v3594_v47, %v3595_v33  ;;  %v882_v28 = vsel %vm879_vm4, %v3597_v34, %v3596_v9  ;;  %v890_v49 = vsel %vm879_vm4, %v3596_v9, %v3597_v34  ;;  %v3599_v3 = vld [vmem:[#allocation21_spill] sm:$0xff]  ;;  %v3602_v47 = vld [vmem:[#allocation8_spill] sm:$0xff] }
 0x1e0   : > { %v2782_v62 = vpop.permute.xlu1 %771  ;;  %v2784_v0 = vpop.permute.xlu0 %1000  ;;  %v639_v40 = vmul.f32 %v623_v43, %v613_v35  ;;  %v640_v10 = vmul.f32 %v624_v25, %v605_v26  ;;  %v819_v1 = vmul.f32 %v803_v6, %v792_v55  ;;  %v820_v13 = vmul.f32 %v804_v63, %v784_v57  ;;  %v3600_v7 = vld [vmem:[#allocation17_spill] sm:$0xff]  ;;  %v952_v63 = vld [vmem:[#allocation2 + $0x230] sm:$0xff] }
 0x1e1   : > { %v1256_v54 = vmul.f32 %v1240_v31, %v1223_v56  ;;  %v1257_v38 = vmul.f32 %v1241_v8, %v1231_v51  ;;  %v1321_v39 = vsel %vm1320_vm8, %v3600_v7, %v3599_v3  ;;  %v1329_v43 = vsel %vm1320_vm8, %v3599_v3, %v3600_v7  ;;  %v3603_v7 = vld [vmem:[#allocation23_spill] sm:$0xff] }
 0x1e2   : > { %779 = vrot.lane.b32.xlu1 %v2649_v17, %s2110_s19  ;;  %1312 = vrot.lane.b32.xlu0 %v2469_v52, %s2115_s24  ;;  %v737_v35 = vadd.f32 %v721_v58, %v639_v40  ;;  %v738_v6 = vadd.f32 %v722_v50, %v640_v10  ;;  %v917_v56 = vmul.f32 %v901_v18, %v890_v49  ;;  %v955_v58 = vld [vmem:[#allocation2 + $0x248] sm:$0xff]  ;;  %v3606_v10 = vld [vmem:[#allocation32_spill] sm:$0xff]  ;;  %s313_s19 = scalar_lea.vmem [#allocation5], %s1898_s17  ;;  %s2043_s17 = scalar_lea.vmem %s2042_s10, 1024 }
 0x1e3   : > { %v918_v51 = vmul.f32 %v902_v15, %v882_v28  ;;  %v1174_v57 = vadd.f32 %v1158_v21, %v1076_v48  ;;  %v1175_v55 = vadd.f32 %v1159_v23, %v1077_v27  ;;  %v1258_v31 = vmul.f32 %v1242_v24, %v1224_v29  ;;  %v3604_v15 = vld [vmem:[#allocation9_spill] sm:$0xff]  ;;  %v3605_v27 = vld [vmem:[#allocation10_spill] sm:$0xff]  ;;  %s1818_s20 = sshll.u32 %s313_s19, 4  ;;  %s3462_s20 = int_to_ptr.vmem [resolvable:$true] %s1818_s20 }
 0x1e4   : > { %v2834_v2 = vpop.permute.xlu1 %869  ;;  %v2836_v19 = vpop.permute.xlu0 %1098  ;;  %v1259_v8 = vmul.f32 %v1243_v30, %v1232_v44  ;;  %v1354_v33 = vmul.f32 %v1338_v14, %v1321_v39  ;;  %v1355_v9 = vmul.f32 %v1339_v12, %v1329_v43  ;;  %v835_v34 = vadd.f32 %v819_v1, %v737_v35  ;;  %v1048_v30 = vld [vmem:[#allocation2 + $0x2a0] sm:$0xff]  ;;  %v1049_v40 = vld [vmem:[#allocation2 + $0x2a8] sm:$0xff]  ;;  %v3611_v12 = vld [vmem:[#allocation19_spill] sm:$0xff]  ;;  %s2037_s9 = scalar_lea.vmem %s3462_s20, 512  ;;  %p2044_p11 = scmp.lt.s32.totalorder %s3462_s20, %s2042_s10 }
 0x1e5   : > { %v836_v3 = vadd.f32 %v820_v13, %v738_v6  ;;  %v1176_v50 = vadd.f32 %v1160_v46, %v2786_v37  ;;  %v1177_v18 = vadd.f32 %v1161_v61, %v2788_v60  ;;  %v2876_v48 = vmul.f32 %v952_v63, %v3604_v15  ;;  %v3607_v37 = vld [vmem:[#allocation29_spill] sm:$0xff]  ;;  %v3612_v39 = vld [vmem:[#allocation22_spill] sm:$0xff]  ;;  %v708_v35 = vld [vmem:[#allocation2 + $0xb8] sm:$0xff]  ;;  %p2038_p6 = scmp.ne.s32.totalorder %s3462_s20, %s2037_s9  ;;  %p2045_p12 = scmp.lt.s32.totalorder %s2043_s17, %s2037_s9 }
 0x1e6   : > { %1296 = vrot.lane.b32.xlu1 %v3598_v45, %s2115_s24  ;;  %1106 = vrot.lane.b32.xlu0 %v2629_v20, %s2113_s22  ;;  %v2879_v21 = vmul.f32 %v953_v11, %v3605_v27  ;;  %v1272_v44 = vadd.f32 %v1256_v54, %v1174_v57  ;;  %v1273_v28 = vadd.f32 %v1257_v38, %v1175_v55  ;;  %v3613_v43 = vld [vmem:[#allocation18_spill] sm:$0xff]  ;;  %v1147_v15 = vld [vmem:[#allocation2 + $0x328] sm:$0xff] }
 0x1e7   : > { %v933_v49 = vadd.f32 %v917_v56, %v835_v34  ;;  %v934_v24 = vadd.f32 %v918_v51, %v836_v3  ;;  %v1029_v60 = vsel %vm1026_vm5, %v3607_v37, %v3606_v10  ;;  %v1037_v46 = vsel %vm1026_vm5, %v3606_v10, %v3607_v37  ;;  %v1340_v11 = vld [vmem:[#allocation2 + $0x410] sm:$0xff]  ;;  %v806_v3 = vld [vmem:[#allocation2 + $0x138] sm:$0xff]  ;;  %p2039_p9 = pnand %p2038_p6, %p2203_p5  ;;  %p2046_p13 = por %p2045_p12, %p2044_p11 }
 0x1e8   : > { %v2866_v25 = vpop.permute.xlu1 %1016  ;;  %v2868_v26 = vpop.permute.xlu0 %1294  ;;  %v2899_v1 = vmul.f32 %v955_v58, %v2469_v52  ;;  %v2901_v13 = vadd.f32 %v1258_v31, %v1176_v50  ;;  %v2903_v54 = vadd.f32 %v1259_v8, %v1177_v18  ;;  %v2905_v38 = vadd.f32 %v1354_v33, %v1272_v44  ;;  %v626_v33 = vld [vmem:[#allocation2 + $0x38] sm:$0xff]  ;;  %v3615_v58 = vld [vmem:[#allocation26_spill] sm:$0xff]  ;;  %v1146_v18 = vld [vmem:[#allocation2 + $0x320] sm:$0xff] }
 0x1e9   : > { %3601 = vst [vmem:[#allocation28_spill] sm:$0xff] %v2868_v26  ;;  %v954_v26 = vld [vmem:[#allocation2 + $0x240] sm:$0xff]  ;;  %v2907_v14 = vadd.f32 %v1355_v9, %v1273_v28  ;;  %v1330_v52 = vsel %vm1320_vm8, %v3612_v39, %v3613_v43  ;;  %v687_v6 = vsel %vm683_vm2, %v2722_v59, %v2758_v5  ;;  %v695_v56 = vsel %vm683_vm2, %v2758_v5, %v2722_v59  ;;  %v3614_v9 = vld [vmem:[#allocation37_spill] sm:$0xff]  ;;  %v805_v5 = vld [vmem:[#allocation2 + $0x130] sm:$0xff]  ;;  %p2040_p10 = pneg %p2039_p9 }
 0x1ea   : > { %1403 = vperm.xlu1 %1986, %v3602_v47   ;;  %1202 = vrot.lane.b32.xlu0 %v3603_v7, %s2114_s23  ;;  %v2896_v61 = vmul.f32 %v954_v26, %v3598_v45  ;;  %3608 = vst [vmem:[#allocation25_spill] sm:$0xff] %v2899_v1  ;;  %3609 = vst [vmem:[#allocation20_spill] sm:$0xff] %v2905_v38  ;;  %v1322_v45 = vsel %vm1320_vm8, %v3613_v43, %v3612_v39  ;;  %v707_v26 = vld [vmem:[#allocation2 + $0xb0] sm:$0xff]  ;;  %v1341_v50 = vld [vmem:[#allocation2 + $0x418] sm:$0xff] }
 0x1eb   : > { %3610 = vst [vmem:[#allocation16_spill] sm:$0xff] %v2907_v14  ;;  %v982_v57 = vadd.f32 %v2765_v36, %v933_v49  ;;  %v983_v55 = vadd.f32 %v2768_v22, %v934_v24  ;;  %v1064_v31 = vmul.f32 %v1048_v30, %v1029_v60  ;;  %v1065_v8 = vmul.f32 %v1049_v40, %v1037_v46  ;;  %v625_v47 = vld [vmem:[#allocation2 + $0x30] sm:$0xff]  ;;  %v3619_v30 = vld [vmem:[#allocation33_spill] sm:$0xff]  ;;  %v904_v60 = vld [vmem:[#allocation2 + $0x1b8] sm:$0xff]  ;;  %p2047_p0 = pnand %p2046_p13, %p2040_p10 }
 0x1ec   : > { %v2881_v23 = vpop.permute.xlu1 %1114  ;;  %v2883_v29 = vpop.permute.xlu0 %1212  ;;  %v606_v34 = vsel %vm602_vm1, %v3614_v9, %v2729_v16  ;;  %v614_v59 = vsel %vm602_vm1, %v2729_v16, %v3614_v9  ;;  %v785_v36 = vsel %vm781_vm3, %v2731_v42, %v2782_v62  ;;  %v793_v22 = vsel %vm781_vm3, %v2782_v62, %v2731_v42  ;;  %v3616_v27 = vld [vmem:[#allocation34_spill] sm:$0xff]  ;;  %v3617_v16 = vld [vmem:[#allocation31_spill] sm:$0xff]  ;;  %v1996_v42 = vld [vmem:[%s3514_s3 + $0x28] sm:$0xff] }
 0x1ed   : > { %v1127_v44 = vsel %vm1124_vm6, %v3617_v16, %v3616_v27  ;;  %v1135_v28 = vsel %vm1124_vm6, %v3616_v27, %v3617_v16  ;;  %v723_v49 = vmul.f32 %v707_v26, %v695_v56  ;;  %v724_v24 = vmul.f32 %v708_v35, %v687_v6  ;;  %v3618_v62 = vld [vmem:[#allocation36_spill] sm:$0xff]  ;;  %v903_v37 = vld [vmem:[#allocation2 + $0x1b0] sm:$0xff]  ;;  %v1245_v6 = vld [vmem:[#allocation2 + $0x3a8] sm:$0xff] }
 0x1ee   : > { %1122 = vrot.lane.b32.xlu1 %v2649_v17, %s2113_s22  ;;  %1298 = vrot.lane.b32.xlu0 %v3611_v12, %s2115_s24  ;;  %v1225_v40 = vsel %vm1222_vm7, %v3619_v30, %v3618_v62  ;;  %v1233_v10 = vsel %vm1222_vm7, %v3618_v62, %v3619_v30  ;;  %v883_v46 = vsel %vm879_vm4, %v2760_v53, %v2834_v2  ;;  %v1244_v35 = vld [vmem:[#allocation2 + $0x3a0] sm:$0xff] }
 0x1ef   : > { %v891_v39 = vsel %vm879_vm4, %v2834_v2, %v2760_v53  ;;  %v641_v56 = vmul.f32 %v625_v47, %v614_v59  ;;  %v642_v9 = vmul.f32 %v626_v33, %v606_v34  ;;  %v821_v27 = vmul.f32 %v805_v5, %v793_v22 }
 0x1f0   : > { %v2927_v51 = vpop.permute.xlu1 %1310  ;;  %v577_v63 = vpop.permute.xlu0 %576  ;;  %v822_v16 = vmul.f32 %v806_v3, %v785_v36  ;;  %v1357_v62 = vmul.f32 %v1341_v50, %v1330_v52  ;;  %v1162_v30 = vmul.f32 %v1146_v18, %v1127_v44  ;;  %v1163_v12 = vmul.f32 %v1147_v15, %v1135_v28  ;;  %v1050_v44 = vld [vmem:[#allocation2 + $0x2b0] sm:$0xff]  ;;  %v1051_v28 = vld [vmem:[#allocation2 + $0x2b8] sm:$0xff] }
 0x1f1   : > { %v739_v14 = vadd.f32 %v723_v49, %v641_v56  ;;  %v740_v38 = vadd.f32 %v724_v24, %v642_v9  ;;  %v919_v1 = vmul.f32 %v903_v37, %v891_v39  ;;  %v920_v53 = vmul.f32 %v904_v60, %v883_v46  ;;  %v1343_v37 = vld [vmem:[#allocation2 + $0x428] sm:$0xff] }
 0x1f2   : > { %1218 = vrot.lane.b32.xlu1 %v3615_v58, %s2114_s23  ;;  %1407 = vperm.xlu0 %1985, %v1996_v42   ;;  %v1356_v42 = vmul.f32 %v1340_v11, %v1322_v45  ;;  %v1080_v2 = vadd.f32 %v1064_v31, %v982_v57  ;;  %v1260_v47 = vmul.f32 %v1244_v35, %v1225_v40  ;;  %v627_v57 = vld [vmem:[#allocation2 + $0x40] sm:$0xff] }
 0x1f3   : > { %v1261_v33 = vmul.f32 %v1245_v6, %v1233_v10  ;;  %v837_v45 = vadd.f32 %v821_v27, %v739_v14  ;;  %v838_v52 = vadd.f32 %v822_v16, %v740_v38  ;;  %v1373_v36 = vadd.f32 %v1357_v62, %v2903_v54  ;;  %v3622_v31 = vld [vmem:[#allocation24_spill] sm:$0xff] }
 0x1f4   : > { %v2976_v43 = vpop.permute.xlu1 %1100  ;;  %v660_v26 = vpop.permute.xlu0 %659  ;;  %v1372_v3 = vadd.f32 %v1356_v42, %v2901_v13  ;;  %v1178_v22 = vadd.f32 %v1162_v30, %v1080_v2  ;;  %v709_v54 = vld [vmem:[#allocation2 + $0xc0] sm:$0xff]  ;;  %v1030_v49 = vsel %vm1026_vm5, %v2784_v0, %v2866_v25  ;;  %v1128_v60 = vsel %vm1124_vm6, %v2836_v19, %v2881_v23 }
 0x1f5   : > { %3620 = vst [vmem:[#allocation30_spill] sm:$0xff] %v2976_v43  ;;  %v1081_v43 = vadd.f32 %v1065_v8, %v983_v55  ;;  %v3621_v55 = vld [vmem:[#allocation35_spill] sm:$0xff]  ;;  %v936_v13 = vadd.f32 %v920_v53, %v838_v52  ;;  %v628_v8 = vld [vmem:[#allocation2 + $0x48] sm:$0xff]  ;;  %v1342_v10 = vld [vmem:[#allocation2 + $0x420] sm:$0xff]  ;;  %v1136_v46 = vsel %vm1124_vm6, %v2881_v23, %v2836_v19  ;;  %v1066_v19 = vmul.f32 %v1050_v44, %v1030_v49 }
 0x1f6   : > { %1314 = vrot.lane.b32.xlu1 %v2540_v32, %s2115_s24  ;;  %1220 = vrot.lane.b32.xlu0 %v2649_v17, %s2114_s23  ;;  %v1323_v38 = vsel %vm1320_vm8, %v3622_v31, %v3621_v55  ;;  %v1331_v14 = vsel %vm1320_vm8, %v3621_v55, %v3622_v31  ;;  %v1276_v18 = vadd.f32 %v1260_v47, %v1178_v22  ;;  %v807_v42 = vld [vmem:[#allocation2 + $0x140] sm:$0xff] }
 0x1f7   : > { %v1179_v50 = vadd.f32 %v1163_v12, %v1081_v43  ;;  %v710_v12 = vld [vmem:[#allocation2 + $0xc8] sm:$0xff]  ;;  %v1149_v43 = vld [vmem:[#allocation2 + $0x338] sm:$0xff]  ;;  %v985_v16 = vadd.f32 %v2879_v21, %v936_v13  ;;  %v1358_v62 = vmul.f32 %v1342_v10, %v1323_v38  ;;  %v1359_v30 = vmul.f32 %v1343_v37, %v1331_v14  ;;  %v3623_v22 = vld [vmem:[#allocation12_spill] sm:$0xff] }
 0x1f8   : > { %v593_v34 = vpop.permute.xlu1 %592  ;;  %v758_v59 = vpop.permute.xlu0 %757  ;;  %v906_v13 = vld [vmem:[#allocation2 + $0x1c8] sm:$0xff] }
 0x1f9   : > { %v607_v11 = vsel %vm602_vm1, %v577_v63, %v593_v34  ;;  %v615_v5 = vsel %vm602_vm1, %v593_v34, %v577_v63  ;;  %v935_v63 = vadd.f32 %v919_v1, %v837_v45  ;;  %v1277_v15 = vadd.f32 %v1261_v33, %v1179_v50 }
 0x1fa   : > { %1204 = vrot.lane.b32.xlu1 %v2629_v20, %s2114_s23  ;;  %1316 = vrot.lane.b32.xlu0 %v3615_v58, %s2115_s24  ;;  %v1038_v1 = vsel %vm1026_vm5, %v2866_v25, %v2784_v0  ;;  %v1148_v25 = vld [vmem:[#allocation2 + $0x330] sm:$0xff]  ;;  %v643_v35 = vmul.f32 %v627_v57, %v615_v5  ;;  %v644_v6 = vmul.f32 %v628_v8, %v607_v11 }
 0x1fb   : > { %v984_v27 = vadd.f32 %v2876_v48, %v935_v63  ;;  %v1067_v23 = vmul.f32 %v1051_v28, %v1038_v1  ;;  %v1164_v34 = vmul.f32 %v1148_v25, %v1128_v60  ;;  %v1165_v45 = vmul.f32 %v1149_v43, %v1136_v46  ;;  %v1997_v5 = vld [vmem:[%s3514_s3 + $0x30] sm:$0xff]  ;;  %v905_v63 = vld [vmem:[#allocation2 + $0x1c0] sm:$0xff] }
 0x1fc   : > { %v676_v24 = vpop.permute.xlu1 %675  ;;  %v856_v40 = vpop.permute.xlu0 %855  ;;  %v3034_v50 = vadd.f32 %v3623_v22, %v1372_v3  ;;  %v3037_v57 = vadd.f32 %v3623_v22, %v1373_v36  ;;  %v1374_v55 = vadd.f32 %v1358_v62, %v1276_v18  ;;  %v1375_v31 = vadd.f32 %v1359_v30, %v1277_v15  ;;  %v1246_v8 = vld [vmem:[#allocation2 + $0x3b0] sm:$0xff] }
 0x1fd   : > { %v688_v39 = vsel %vm683_vm2, %v660_v26, %v676_v24  ;;  %v696_v0 = vsel %vm683_vm2, %v676_v24, %v660_v26  ;;  %v808_v26 = vld [vmem:[#allocation2 + $0x148] sm:$0xff]  ;;  %v1082_v38 = vadd.f32 %v1066_v19, %v984_v27  ;;  %v1083_v14 = vadd.f32 %v1067_v23, %v985_v16  ;;  %v3624_v25 = vld [vmem:[#allocation14_spill] sm:$0xff] }
 0x1fe   : > { %v725_v56 = vmul.f32 %v709_v54, %v696_v0  ;;  %v726_v9 = vmul.f32 %v710_v12, %v688_v39  ;;  %1300 = vrot.lane.b32.xlu1 %v3603_v7, %s2115_s24  ;;  %1302 = vrot.lane.b32.xlu0 %v2629_v20, %s2115_s24  ;;  %v1247_v54 = vld [vmem:[#allocation2 + $0x3b8] sm:$0xff]  ;;  %v1226_v3 = vsel %vm1222_vm7, %v2720_v41, %v2883_v29  ;;  %v1436_v60 = vadd.f32 3.0, %v3034_v50  ;;  %v1052_v39 = vld [vmem:[#allocation2 + $0x2c0] sm:$0xff]  ;;  %v1053_v0 = vld [vmem:[#allocation2 + $0x2c8] sm:$0xff] }
 0x1ff   : > { %v1234_v36 = vsel %vm1222_vm7, %v2883_v29, %v2720_v41  ;;  %v1180_v28 = vadd.f32 %v1164_v34, %v1082_v38  ;;  %v1181_v49 = vadd.f32 %v1165_v45, %v1083_v14  ;;  %v1437_v41 = vadd.f32 3.0, %v3037_v57  ;;  %v3626_v45 = vld [vmem:[#allocation25_spill] sm:$0xff] }
 0x200   : > { %v741_v53 = vadd.f32 %v725_v56, %v643_v35  ;;  %v742_v2 = vadd.f32 %v726_v9, %v644_v6  ;;  %v774_v47 = vpop.permute.xlu1 %773  ;;  %v1003_v33 = vpop.permute.xlu0 %1002  ;;  %v1262_v29 = vmul.f32 %v1246_v8, %v1226_v3  ;;  %v1263_v46 = vmul.f32 %v1247_v54, %v1234_v36  ;;  %v1345_v6 = vld [vmem:[#allocation2 + $0x438] sm:$0xff]  ;;  %v3625_v56 = vld [vmem:[#allocation28_spill] sm:$0xff] }
 0x201   : > { %v786_v48 = vsel %vm781_vm3, %v758_v59, %v774_v47  ;;  %v794_v21 = vsel %vm781_vm3, %v774_v47, %v758_v59  ;;  %v1998_v59 = vld [vmem:[%s3514_s3 + $0x38] sm:$0xff]  ;;  %v3059_v43 = vadd.f32 %v3624_v25, %v1374_v55  ;;  %v3062_v35 = vadd.f32 %v3624_v25, %v1375_v31  ;;  %v1249_v31 = vld [vmem:[#allocation2 + $0x3c8] sm:$0xff]  ;;  %v3628_v3 = vld [vmem:[#allocation20_spill] sm:$0xff] }
 0x202   : > { %v823_v52 = vmul.f32 %v807_v42, %v794_v21  ;;  %v824_v11 = vmul.f32 %v808_v26, %v786_v48  ;;  %1411 = vperm.xlu1 %1986, %v1997_v5   ;;  %1415 = vperm.xlu0 %1985, %v1998_v59   ;;  %v1324_v9 = vsel %vm1320_vm8, %v3625_v56, %v2927_v51  ;;  %v3627_v5 = vld [vmem:[#allocation30_spill] sm:$0xff]  ;;  %v3629_v36 = vld [vmem:[#allocation11_spill] sm:$0xff] }
 0x203   : > { %v1332_v27 = vsel %vm1320_vm8, %v2927_v51, %v3625_v56  ;;  %v1278_v42 = vadd.f32 %v1262_v29, %v1180_v28  ;;  %v1279_v26 = vadd.f32 %v1263_v46, %v1181_v49  ;;  %v1452_v29 = vmax.f32 %v1436_v60, 0.0 }
 0x204   : > { %v839_v12 = vadd.f32 %v823_v52, %v741_v53  ;;  %v840_v18 = vadd.f32 %v824_v11, %v742_v2  ;;  %v872_v15 = vpop.permute.xlu1 %871  ;;  %v1199_v44 = vpop.permute.xlu0 %1198  ;;  %v1150_v53 = vld [vmem:[#allocation2 + $0x340] sm:$0xff]  ;;  %v1151_v2 = vld [vmem:[#allocation2 + $0x348] sm:$0xff]  ;;  %v1361_v11 = vmul.f32 %v1345_v6, %v1332_v27  ;;  %v1453_v46 = vmax.f32 %v1437_v41, 0.0 }
 0x205   : > { %v884_v1 = vsel %vm879_vm4, %v856_v40, %v872_v15  ;;  %v892_v24 = vsel %vm879_vm4, %v872_v15, %v856_v40  ;;  %v1344_v40 = vld [vmem:[#allocation2 + $0x430] sm:$0xff]  ;;  %v1438_v25 = vadd.f32 3.0, %v3059_v43  ;;  %v1468_v27 = vmin.f32 %v1452_v29, 6.0 }
 0x206   : > { %v921_v10 = vmul.f32 %v905_v63, %v892_v24  ;;  %v922_v37 = vmul.f32 %v906_v13, %v884_v1  ;;  %1318 = vrot.lane.b32.xlu1 %v2649_v17, %s2115_s24  ;;  %v1360_v52 = vmul.f32 %v1344_v40, %v1324_v9  ;;  %v1439_v40 = vadd.f32 3.0, %v3062_v35  ;;  %s3468_s24 = scalar_lea.hbm %s3519_s8, %s1917_s21 }
 0x208   : > { %v937_v16 = vadd.f32 %v921_v10, %v839_v12  ;;  %v938_v19 = vadd.f32 %v922_v37, %v840_v18  ;;  %v1019_v23 = vpop.permute.xlu1 %1018  ;;  %v1117_v47 = vpop.permute.xlu0 %1116  ;;  %v1418_v12 = vadd.f32 %v3629_v36, %v3628_v3  ;;  %v3630_v18 = vld [vmem:[#allocation16_spill] sm:$0xff]  ;;  %v1376_v10 = vadd.f32 %v1360_v52, %v1278_v42  ;;  %v629_v52 = vld [vmem:[#allocation2 + $0x50] sm:$0xff] }
 0x209   : > { %v1031_v62 = vsel %vm1026_vm5, %v1003_v33, %v1019_v23  ;;  %v1039_v30 = vsel %vm1026_vm5, %v1019_v23, %v1003_v33  ;;  %v1129_v22 = vsel %vm1124_vm6, %v3627_v5, %v1117_v47  ;;  %v1137_v55 = vsel %vm1124_vm6, %v1117_v47, %v3627_v5  ;;  %v1248_v33 = vld [vmem:[#allocation2 + $0x3c0] sm:$0xff] }
 0x20a   : > { %v986_v34 = vadd.f32 %v2896_v61, %v937_v16  ;;  %v987_v48 = vadd.f32 %v3626_v45, %v938_v19  ;;  %v1068_v21 = vmul.f32 %v1052_v39, %v1031_v62  ;;  %v1069_v51 = vmul.f32 %v1053_v0, %v1039_v30  ;;  %v3631_v19 = vld [vmem:[#allocation13_spill] sm:$0xff] }
 0x20b   : > { %v1166_v59 = vmul.f32 %v1150_v53, %v1129_v22  ;;  %v1167_v61 = vmul.f32 %v1151_v2, %v1137_v55  ;;  %v1419_v15 = vadd.f32 %v3629_v36, %v3630_v18  ;;  %v1377_v37 = vadd.f32 %v1361_v11, %v1279_v26 }
 0x20c   : > { %v1084_v38 = vadd.f32 %v1068_v21, %v986_v34  ;;  %v1085_v14 = vadd.f32 %v1069_v51, %v987_v48  ;;  %v1215_v63 = vpop.permute.xlu1 %1214  ;;  %v579_v54 = vpop.permute.xlu0 %578  ;;  %v1434_v56 = vadd.f32 3.0, %v1418_v12  ;;  %v1469_v16 = vmin.f32 %v1453_v46, 6.0 }
 0x20d   : > { %v1227_v13 = vsel %vm1222_vm7, %v1199_v44, %v1215_v63  ;;  %v1235_v8 = vsel %vm1222_vm7, %v1215_v63, %v1199_v44  ;;  %v1435_v9 = vadd.f32 3.0, %v1419_v15  ;;  %v1424_v23 = vadd.f32 %v3631_v19, %v1376_v10  ;;  %v809_v10 = vld [vmem:[#allocation2 + $0x150] sm:$0xff] }
 0x20e   : > { %v1182_v28 = vadd.f32 %v1166_v59, %v1084_v38  ;;  %v1183_v49 = vadd.f32 %v1167_v61, %v1085_v14  ;;  %v1264_v1 = vmul.f32 %v1248_v33, %v1227_v13  ;;  %v1265_v24 = vmul.f32 %v1249_v31, %v1235_v8  ;;  %v630_v33 = vld [vmem:[#allocation2 + $0x58] sm:$0xff]  ;;  %v711_v31 = vld [vmem:[#allocation2 + $0xd0] sm:$0xff] }
 0x20f   : > { %v1425_v60 = vadd.f32 %v3631_v19, %v1377_v37  ;;  %v1454_v42 = vmax.f32 %v1438_v25, 0.0  ;;  %v1455_v26 = vmax.f32 %v1439_v40, 0.0  ;;  %v1450_v30 = vmax.f32 %v1434_v56, 0.0  ;;  %v712_v38 = vld [vmem:[#allocation2 + $0xd8] sm:$0xff] }
 0x210   : > { %v3092_v39 = vadd.f32 %v1264_v1, %v1182_v28  ;;  %v3094_v0 = vadd.f32 %v1265_v24, %v1183_v49  ;;  %v3096_v44 = vpop.permute.xlu1 %1004  ;;  %v662_v6 = vpop.permute.xlu0 %661  ;;  %v1451_v53 = vmax.f32 %v1435_v9, 0.0  ;;  %v1484_v2 = vmul.f32 %v1468_v27, %v3034_v50  ;;  %v810_v37 = vld [vmem:[#allocation2 + $0x158] sm:$0xff] }
 0x211   : > { %v1485_v47 = vmul.f32 %v1469_v16, %v3037_v57  ;;  %v1440_v34 = vadd.f32 3.0, %v1424_v23  ;;  %v1441_v45 = vadd.f32 3.0, %v1425_v60  ;;  %v1470_v21 = vmin.f32 %v1454_v42, 6.0 }
 0x212   : > { %v1471_v51 = vmin.f32 %v1455_v26, 6.0  ;;  %v1466_v55 = vmin.f32 %v1450_v30, 6.0  ;;  %v1467_v50 = vmin.f32 %v1451_v53, 6.0  ;;  %v3110_v14 = vmul.f32 0.16666667, %v1484_v2  ;;  %v907_v30 = vld [vmem:[#allocation2 + $0x1d0] sm:$0xff] }
 0x213   : > { %v3112_v57 = vmul.f32 0.16666667, %v1485_v47  ;;  %v1456_v59 = vmax.f32 %v1440_v34, 0.0  ;;  %v1457_v61 = vmax.f32 %v1441_v45, 0.0  ;;  %v1486_v13 = vmul.f32 %v1470_v21, %v3059_v43  ;;  %v908_v53 = vld [vmem:[#allocation2 + $0x1d8] sm:$0xff] }
 0x214   : > { %v3102_v41 = vpop.permute.xlu1 %1200  ;;  %v760_v62 = vpop.permute.xlu0 %759  ;;  %3632 = vst [vmem:[#allocation27_spill] sm:$0xff] %v3110_v14  ;;  %v1487_v8 = vmul.f32 %v1471_v51, %v3062_v35  ;;  %v1482_v18 = vmul.f32 %v1466_v55, %v1418_v12  ;;  %v1483_v43 = vmul.f32 %v1467_v50, %v1419_v15 }
 0x215   : > { %3633 = vst [vmem:[#allocation15_spill] sm:$0xff] %v3112_v57  ;;  %v1517_v29 = vadd.f32 %v3112_v57, %v3110_v14  ;;  %v1472_v46 = vmin.f32 %v1456_v59, 6.0  ;;  %v1473_v35 = vmin.f32 %v1457_v61, 6.0  ;;  %v3122_v9 = vmul.f32 0.16666667, %v1486_v13  ;;  %v910_v57 = vld [vmem:[#allocation2 + $0x1e8] sm:$0xff] }
 0x216   : > { %v3136_v2 = vmul.f32 0.16666667, %v1482_v18  ;;  %v1153_v18 = vld [vmem:[#allocation2 + $0x358] sm:$0xff]  ;;  %v959_v14 = vld [vmem:[#allocation2 + $0x268] sm:$0xff] }
 0x217   : > { %v1488_v47 = vmul.f32 %v1472_v46, %v1424_v23  ;;  %v1489_v34 = vmul.f32 %v1473_v35, %v1425_v60 }
 0x218   : > { %v595_v48 = vpop.permute.xlu1 %594  ;;  %v858_v22 = vpop.permute.xlu0 %857 }
 0x219   : > { %v608_v11 = vsel %vm602_vm1, %v579_v54, %v595_v48  ;;  %v616_v5 = vsel %vm602_vm1, %v595_v48, %v579_v54  ;;  %v956_v48 = vld [vmem:[#allocation2 + $0x250] sm:$0xff]  ;;  %v3149_v59 = vmul.f32 0.16666667, %v1488_v47  ;;  %v3151_v61 = vmul.f32 0.16666667, %v1489_v34 }
 0x21a   : > { %v645_v28 = vmul.f32 %v629_v52, %v616_v5  ;;  %v646_v49 = vmul.f32 %v630_v33, %v608_v11  ;;  %v3140_v52 = vmul.f32 0.16666667, %v1483_v43  ;;  %v957_v11 = vld [vmem:[#allocation2 + $0x258] sm:$0xff]  ;;  %v1054_v33 = vld [vmem:[#allocation2 + $0x2d0] sm:$0xff] }
 0x21c   : > { %v678_v63 = vpop.permute.xlu1 %677  ;;  %v1103_v36 = vpop.permute.xlu0 %1102 }
 0x21d   : > { %v689_v54 = vsel %vm683_vm2, %v662_v6, %v678_v63  ;;  %v697_v3 = vsel %vm683_vm2, %v678_v63, %v662_v6  ;;  %v3124_v6 = vmul.f32 0.16666667, %v1487_v8  ;;  %v973_v63 = vmul.f32 %v957_v11, %v2540_v32 }
 0x21e   : > { %v727_v1 = vmul.f32 %v711_v31, %v697_v3  ;;  %v728_v24 = vmul.f32 %v712_v38, %v689_v54  ;;  %v1055_v31 = vld [vmem:[#allocation2 + $0x2d8] sm:$0xff]  ;;  %v1152_v3 = vld [vmem:[#allocation2 + $0x350] sm:$0xff]  ;;  %v1523_v32 = vadd.f32 %v3151_v61, %v3149_v59 }
 0x21f   : > { %v1520_v51 = vadd.f32 %v3124_v6, %v3122_v9  ;;  %v3634_v38 = vld [vmem:[#allocation19_spill] sm:$0xff] }
 0x220   : > { %v743_v25 = vadd.f32 %v727_v1, %v645_v28  ;;  %v744_v40 = vadd.f32 %v728_v24, %v646_v49  ;;  %v776_v56 = vpop.permute.xlu1 %775  ;;  %v1021_v16 = vpop.permute.xlu0 %1020  ;;  %v972_v50 = vmul.f32 %v956_v48, %v3634_v38 }
 0x221   : > { %v787_v12 = vsel %vm781_vm3, %v760_v62, %v776_v56  ;;  %v795_v27 = vsel %vm781_vm3, %v776_v56, %v760_v62  ;;  %v1032_v15 = vsel %vm1026_vm5, %v3096_v44, %v1021_v16  ;;  %v1040_v26 = vsel %vm1026_vm5, %v1021_v16, %v3096_v44  ;;  %1518 = vadd.xlane.f32.xlu0 %v1517_v29 }
 0x222   : > { %v825_v19 = vmul.f32 %v809_v10, %v795_v27  ;;  %v826_v42 = vmul.f32 %v810_v37, %v787_v12  ;;  %v1070_v24 = vmul.f32 %v1054_v33, %v1032_v15  ;;  %v1071_v10 = vmul.f32 %v1055_v31, %v1040_v26 }
 0x224   : > { %v841_v45 = vadd.f32 %v825_v19, %v743_v25  ;;  %v842_v62 = vadd.f32 %v826_v42, %v744_v40  ;;  %v874_v21 = vpop.permute.xlu1 %873  ;;  %v3146_v55 = vpop.permute.xlu0 %580 }
 0x225   : > { %v885_v44 = vsel %vm879_vm4, %v858_v22, %v874_v21  ;;  %v893_v5 = vsel %vm879_vm4, %v874_v21, %v858_v22  ;;  %1521 = vadd.xlane.f32.xlu0 %v1520_v51  ;;  %v1514_v22 = vadd.f32 %v3140_v52, %v3136_v2 }
 0x226   : > { %v923_v23 = vmul.f32 %v907_v30, %v893_v5  ;;  %v924_v60 = vmul.f32 %v908_v53, %v885_v44  ;;  %v1250_v5 = vld [vmem:[#allocation2 + $0x3d0] sm:$0xff] }
 0x228   : > { %v939_v13 = vadd.f32 %v923_v23, %v841_v45  ;;  %v940_v8 = vadd.f32 %v924_v60, %v842_v62  ;;  %v1119_v54 = vpop.permute.xlu1 %1118  ;;  %v664_v1 = vpop.permute.xlu0 %663  ;;  %v1251_v23 = vld [vmem:[#allocation2 + $0x3d8] sm:$0xff] }
 0x229   : > { %v1130_v28 = vsel %vm1124_vm6, %v1103_v36, %v1119_v54  ;;  %v1138_v49 = vsel %vm1124_vm6, %v1119_v54, %v1103_v36 }
 0x22a   : > { %v988_v37 = vadd.f32 %v972_v50, %v939_v13  ;;  %v989_v29 = vadd.f32 %v973_v63, %v940_v8  ;;  %1515 = vadd.xlane.f32.xlu1 %v1514_v22  ;;  %v1168_v35 = vmul.f32 %v1152_v3, %v1130_v28  ;;  %v1169_v25 = vmul.f32 %v1153_v18, %v1138_v49  ;;  %v713_v3 = vld [vmem:[#allocation2 + $0xe0] sm:$0xff]  ;;  %v714_v28 = vld [vmem:[#allocation2 + $0xe8] sm:$0xff] }
 0x22c   : > { %v1086_v43 = vadd.f32 %v1070_v24, %v988_v37  ;;  %v1087_v46 = vadd.f32 %v1071_v10, %v989_v29  ;;  %v3162_v40 = vpop.permute.xlu1 %1104  ;;  %v762_v56 = vpop.permute.xlu0 %761  ;;  %v1346_v24 = vld [vmem:[#allocation2 + $0x440] sm:$0xff] }
 0x22d   : > { %v631_v29 = vld [vmem:[#allocation2 + $0x60] sm:$0xff] }
 0x22e   : > { %v1184_v12 = vadd.f32 %v1168_v35, %v1086_v43  ;;  %v1185_v27 = vadd.f32 %v1169_v25, %v1087_v46  ;;  %1524 = vadd.xlane.f32.xlu1 %v1523_v32  ;;  %v811_v43 = vld [vmem:[#allocation2 + $0x160] sm:$0xff] }
 0x230   : > { %v597_v36 = vpop.permute.xlu1 %596  ;;  %v860_v16 = vpop.permute.xlu0 %859 }
 0x231   : > { %v617_v32 = vsel %vm602_vm1, %v597_v36, %v3146_v55  ;;  %v609_v25 = vsel %vm602_vm1, %v3146_v55, %v597_v36  ;;  %v958_v36 = vld [vmem:[#allocation2 + $0x260] sm:$0xff] }
 0x234   : > { %v680_v19 = vpop.permute.xlu1 %679  ;;  %v3164_v42 = vpop.permute.xlu0 %1006 }
 0x235   : > { %v698_v18 = vsel %vm683_vm2, %v680_v19, %v664_v1  ;;  %v690_v49 = vsel %vm683_vm2, %v664_v1, %v680_v19  ;;  %v632_v1 = vld [vmem:[#allocation2 + $0x68] sm:$0xff] }
 0x238   : > { %v778_v15 = vpop.permute.xlu1 %777  ;;  %v3166_v26 = vpop.permute.xlu0 %1120 }
 0x239   : > { %v796_v46 = vsel %vm781_vm3, %v778_v15, %v762_v56  ;;  %v788_v19 = vsel %vm781_vm3, %v762_v56, %v778_v15 }
 0x23c   : > { %v876_v30 = vpop.permute.xlu1 %875  ;;  %v3168_v53 = vpop.permute.xlu0 %582 }
 0x23d   : > { %v886_v55 = vsel %vm879_vm4, %v860_v16, %v876_v30 }
 0x240   : > { %v3170_v47 = vpop.permute.xlu1 %1022  ;;  %v3172_v34 = vpop.permute.xlu0 %665 }
 0x244   : > { %v3174_v45 = vpop.permute.xlu1 %861  ;;  %v3176_v62 = vpop.permute.xlu0 %763 }
 0x248   : > { %v3178_v48 = vpop.permute.xlu1 %1008  ;;  %v3180_v21 = vpop.permute.xlu0 %877 }
 0x24c   : > { %v3182_v51 = vpop.permute.xlu1 %598  ;;  %v3184_v11 = vpop.permute.xlu0 %1024 }
 0x250   : > { %v3186_v44 = vpop.permute.xlu1 %681  ;;  %v1217_v60 = vpop.permute.xlu0 %1216 }
 0x251   : > { %v1228_v33 = vsel %vm1222_vm7, %v3102_v41, %v1217_v60  ;;  %v1236_v31 = vsel %vm1222_vm7, %v1217_v60, %v3102_v41  ;;  %v1347_v41 = vld [vmem:[#allocation2 + $0x448] sm:$0xff]  ;;  %v894_v60 = vsel %vm879_vm4, %v876_v30, %v860_v16 }
 0x252   : > { %v1266_v38 = vmul.f32 %v1250_v5, %v1228_v33  ;;  %v1267_v50 = vmul.f32 %v1251_v23, %v1236_v31  ;;  %v730_v5 = vmul.f32 %v714_v28, %v690_v49  ;;  %v909_v23 = vld [vmem:[#allocation2 + $0x1e0] sm:$0xff] }
 0x254   : > { %v3194_v63 = vpop.permute.xlu1 %779  ;;  %v3196_v13 = vadd.f32 %v1266_v38, %v1184_v12  ;;  %v3198_v8 = vadd.f32 %v1267_v50, %v1185_v27  ;;  %v1313_v54 = vpop.permute.xlu0 %1312  ;;  %v729_v12 = vmul.f32 %v713_v3, %v698_v18  ;;  %v812_v27 = vld [vmem:[#allocation2 + $0x168] sm:$0xff]  ;;  %v647_v38 = vmul.f32 %v631_v29, %v617_v32 }
 0x255   : > { %v827_v50 = vmul.f32 %v811_v43, %v796_v46  ;;  %v925_v18 = vmul.f32 %v909_v23, %v894_v60  ;;  %v975_v32 = vmul.f32 %v959_v14, %v3615_v58  ;;  %v1033_v46 = vsel %vm1026_vm5, %v3164_v42, %v3170_v47  ;;  %v1056_v58 = vld [vmem:[#allocation2 + $0x2e0] sm:$0xff]  ;;  %v633_v14 = vld [vmem:[#allocation2 + $0x70] sm:$0xff]  ;;  %v814_v23 = vld [vmem:[#allocation2 + $0x178] sm:$0xff] }
 0x256   : > { %v745_v3 = vadd.f32 %v729_v12, %v647_v38  ;;  %v618_v12 = vsel %vm602_vm1, %v3182_v51, %v3168_v53  ;;  %v789_v60 = vsel %vm781_vm3, %v3176_v62, %v3194_v63 }
 0x258   : > { %v1297_v22 = vpop.permute.xlu1 %1296  ;;  %v3213_v35 = vpop.permute.xlu0 %1106 }
 0x259   : > { %v1325_v10 = vsel %vm1320_vm8, %v1297_v22, %v1313_v54  ;;  %v1333_v37 = vsel %vm1320_vm8, %v1313_v54, %v1297_v22  ;;  %v648_v54 = vmul.f32 %v632_v1, %v609_v25  ;;  %v828_v22 = vmul.f32 %v812_v27, %v788_v19  ;;  %v715_v1 = vld [vmem:[#allocation2 + $0xf0] sm:$0xff] }
 0x25a   : > { %v1362_v33 = vmul.f32 %v1346_v24, %v1325_v10  ;;  %v1363_v31 = vmul.f32 %v1347_v41, %v1333_v37  ;;  %v843_v24 = vadd.f32 %v827_v50, %v745_v3  ;;  %v926_v41 = vmul.f32 %v910_v57, %v886_v55  ;;  %v634_v57 = vld [vmem:[#allocation2 + $0x78] sm:$0xff] }
 0x25b   : > { %v746_v56 = vadd.f32 %v730_v5, %v648_v54  ;;  %v974_v10 = vmul.f32 %v958_v36, %v3603_v7  ;;  %v699_v7 = vsel %vm683_vm2, %v3186_v44, %v3172_v34  ;;  %v610_v25 = vsel %vm602_vm1, %v3168_v53, %v3182_v51 }
 0x25c   : > { %v3224_v15 = vpop.permute.xlu0 %1202  ;;  %v1378_v28 = vadd.f32 %v1362_v33, %v3092_v39  ;;  %v1379_v49 = vadd.f32 %v1363_v31, %v3094_v0  ;;  %v941_v43 = vadd.f32 %v925_v18, %v843_v24  ;;  %v716_v39 = vld [vmem:[#allocation2 + $0xf8] sm:$0xff]  ;;  %v691_v0 = vsel %vm683_vm2, %v3172_v34, %v3186_v44  ;;  %v813_v44 = vld [vmem:[#allocation2 + $0x170] sm:$0xff]  ;;  %v1057_v33 = vld [vmem:[#allocation2 + $0x2e8] sm:$0xff] }
 0x25d   : > { %v844_v29 = vadd.f32 %v828_v22, %v746_v56  ;;  %v1041_v34 = vsel %vm1026_vm5, %v3170_v47, %v3164_v42  ;;  %v797_v53 = vsel %vm781_vm3, %v3194_v63, %v3176_v62  ;;  %v731_v31 = vmul.f32 %v715_v1, %v699_v7 }
 0x25e   : > { %v732_v38 = vmul.f32 %v716_v39, %v691_v0  ;;  %v990_v47 = vadd.f32 %v974_v10, %v941_v43  ;;  %v1072_v22 = vmul.f32 %v1056_v58, %v1033_v46  ;;  %v649_v55 = vmul.f32 %v633_v14, %v618_v12  ;;  %v911_v10 = vld [vmem:[#allocation2 + $0x1f0] sm:$0xff] }
 0x25f   : > { %v942_v5 = vadd.f32 %v926_v41, %v844_v29  ;;  %v650_v36 = vmul.f32 %v634_v57, %v610_v25  ;;  %v829_v3 = vmul.f32 %v813_v44, %v797_v53  ;;  %v830_v18 = vmul.f32 %v814_v23, %v789_v60  ;;  %v1154_v57 = vld [vmem:[#allocation2 + $0x360] sm:$0xff]  ;;  %v1155_v25 = vld [vmem:[#allocation2 + $0x368] sm:$0xff] }
 0x260   : > { %v1299_v50 = vpop.permute.xlu0 %1298  ;;  %v1073_v24 = vmul.f32 %v1057_v33, %v1041_v34  ;;  %v887_v62 = vsel %vm879_vm4, %v3174_v45, %v3180_v21  ;;  %v895_v63 = vsel %vm879_vm4, %v3180_v21, %v3174_v45  ;;  %v747_v29 = vadd.f32 %v731_v31, %v649_v55  ;;  %v960_v33 = vld [vmem:[#allocation2 + $0x270] sm:$0xff]  ;;  %v961_v31 = vld [vmem:[#allocation2 + $0x278] sm:$0xff] }
 0x261   : > { %v748_v43 = vadd.f32 %v732_v38, %v650_v36  ;;  %v1139_v0 = vsel %vm1124_vm6, %v3166_v26, %v3162_v40  ;;  %v1088_v7 = vadd.f32 %v1072_v22, %v990_v47 }
 0x262   : > { %v845_v45 = vadd.f32 %v829_v3, %v747_v29  ;;  %v1171_v22 = vmul.f32 %v1155_v25, %v1139_v0  ;;  %v1255_v25 = vld [vmem:[#allocation2 + $0x3f8] sm:$0xff] }
 0x263   : > { %v846_v21 = vadd.f32 %v830_v18, %v748_v43  ;;  %v1350_v43 = vld [vmem:[#allocation2 + $0x460] sm:$0xff] }
 0x265   : > { %v1404_v37 = vpop.permute.xlu1 %1403 }
 0x266   : > { %v1426_v16 = vadd.f32 %v1404_v37, %v1378_v28  ;;  %v1427_v30 = vadd.f32 %v1404_v37, %v1379_v49  ;;  %v991_v49 = vadd.f32 %v975_v32, %v942_v5  ;;  %v912_v37 = vld [vmem:[#allocation2 + $0x1f8] sm:$0xff]  ;;  %v1131_v32 = vsel %vm1124_vm6, %v3162_v40, %v3166_v26  ;;  %v1252_v40 = vld [vmem:[#allocation2 + $0x3e0] sm:$0xff]  ;;  %v1253_v26 = vld [vmem:[#allocation2 + $0x3e8] sm:$0xff] }
 0x267   : > { %v1170_v47 = vmul.f32 %v1154_v57, %v1131_v32  ;;  %v1156_v32 = vld [vmem:[#allocation2 + $0x370] sm:$0xff] }
 0x268   : > { %v1442_v27 = vadd.f32 3.0, %v1426_v16  ;;  %v1443_v19 = vadd.f32 3.0, %v1427_v30  ;;  %v1089_v12 = vadd.f32 %v1073_v24, %v991_v49  ;;  %v977_v49 = vmul.f32 %v961_v31, %v2649_v17  ;;  %v1254_v57 = vld [vmem:[#allocation2 + $0x3f0] sm:$0xff] }
 0x269   : > { %v3262_v51 = vpop.permute.xlu1 %1122  ;;  %v1186_v24 = vadd.f32 %v1170_v47, %v1088_v7 }
 0x26a   : > { %v1458_v54 = vmax.f32 %v1442_v27, 0.0  ;;  %v1459_v42 = vmax.f32 %v1443_v19, 0.0  ;;  %v927_v27 = vmul.f32 %v911_v10, %v895_v63  ;;  %v928_v19 = vmul.f32 %v912_v37, %v887_v62 }
 0x26b   : > { %v1187_v62 = vadd.f32 %v1171_v22, %v1089_v12  ;;  %v1034_v63 = vsel %vm1026_vm5, %v3178_v48, %v3184_v11  ;;  %v1140_v17 = vsel %vm1124_vm6, %v3262_v51, %v3213_v35 }
 0x26c   : > { %v1474_v56 = vmin.f32 %v1458_v54, 6.0  ;;  %v1475_v28 = vmin.f32 %v1459_v42, 6.0  ;;  %v943_v55 = vadd.f32 %v927_v27, %v845_v45  ;;  %v944_v36 = vadd.f32 %v928_v19, %v846_v21 }
 0x26d   : > { %v1219_v41 = vpop.permute.xlu1 %1218  ;;  %v1408_v39 = vpop.permute.xlu0 %1407 }
 0x26e   : > { %v1490_v46 = vmul.f32 %v1474_v56, %v1426_v16  ;;  %v1491_v1 = vmul.f32 %v1475_v28, %v1427_v30  ;;  %v1348_v16 = vld [vmem:[#allocation2 + $0x450] sm:$0xff]  ;;  %v1349_v30 = vld [vmem:[#allocation2 + $0x458] sm:$0xff]  ;;  %v1229_v5 = vsel %vm1222_vm7, %v3224_v15, %v1219_v41  ;;  %v1237_v44 = vsel %vm1222_vm7, %v1219_v41, %v3224_v15 }
 0x26f   : > { %v1268_v15 = vmul.f32 %v1252_v40, %v1229_v5  ;;  %v1269_v3 = vmul.f32 %v1253_v26, %v1237_v44  ;;  %v976_v28 = vmul.f32 %v960_v33, %v2629_v20  ;;  %v1042_v41 = vsel %vm1026_vm5, %v3184_v11, %v3178_v48  ;;  %v1157_v48 = vld [vmem:[#allocation2 + $0x378] sm:$0xff] }
 0x270   : > { %v3280_v58 = vmul.f32 0.16666667, %v1490_v46  ;;  %v3282_v14 = vmul.f32 0.16666667, %v1491_v1  ;;  %v993_v29 = vadd.f32 %v977_v49, %v944_v36  ;;  %v1132_v20 = vsel %vm1124_vm6, %v3213_v35, %v3262_v51  ;;  %v1351_v46 = vld [vmem:[#allocation2 + $0x468] sm:$0xff]  ;;  %v1059_v1 = vld [vmem:[#allocation2 + $0x2f8] sm:$0xff] }
 0x271   : > { %v1315_v34 = vpop.permute.xlu1 %1314  ;;  %v1221_v42 = vpop.permute.xlu0 %1220  ;;  %v992_v37 = vadd.f32 %v976_v28, %v943_v55  ;;  %v1284_v11 = vadd.f32 %v1268_v15, %v1186_v24  ;;  %v1075_v40 = vmul.f32 %v1059_v1, %v1042_v41  ;;  %v1172_v26 = vmul.f32 %v1156_v32, %v1132_v20  ;;  %v1353_v28 = vld [vmem:[#allocation2 + $0x478] sm:$0xff] }
 0x272   : > { %v1326_v23 = vsel %vm1320_vm8, %v1299_v50, %v1315_v34  ;;  %v1334_v60 = vsel %vm1320_vm8, %v1315_v34, %v1299_v50  ;;  %v1526_v53 = vadd.f32 %v3282_v14, %v3280_v58  ;;  %v1173_v44 = vmul.f32 %v1157_v48, %v1140_v17 }
 0x273   : > { %v1364_v38 = vmul.f32 %v1348_v16, %v1326_v23  ;;  %v1365_v54 = vmul.f32 %v1349_v30, %v1334_v60 }
 0x274   : > { %1527 = vadd.xlane.f32.xlu0 %v1526_v53 }
 0x275   : > { %v1380_v18 = vadd.f32 %v1364_v38, %v3196_v13  ;;  %v1381_v56 = vadd.f32 %v1365_v54, %v3198_v8  ;;  %v1205_v50 = vpop.permute.xlu1 %1204  ;;  %v1058_v8 = vld [vmem:[#allocation2 + $0x2f0] sm:$0xff]  ;;  %v1317_v45 = vpop.permute.xlu0 %1316  ;;  %v1091_v54 = vadd.f32 %v1075_v40, %v993_v29 }
 0x276   : > { %v1230_v16 = vsel %vm1222_vm7, %v1205_v50, %v1221_v42  ;;  %v1238_v30 = vsel %vm1222_vm7, %v1221_v42, %v1205_v50  ;;  %v1074_v34 = vmul.f32 %v1058_v8, %v1034_v63  ;;  %v1352_v50 = vld [vmem:[#allocation2 + $0x470] sm:$0xff] }
 0x277   : > { %v1428_v13 = vadd.f32 %v1408_v39, %v1380_v18  ;;  %v1429_v10 = vadd.f32 %v1408_v39, %v1381_v56  ;;  %v1285_v39 = vadd.f32 %v1269_v3, %v1187_v62  ;;  %v1270_v42 = vmul.f32 %v1254_v57, %v1230_v16 }
 0x278   : > { %v1090_v38 = vadd.f32 %v1074_v34, %v992_v37  ;;  %v1271_v47 = vmul.f32 %v1255_v25, %v1238_v30  ;;  %v1189_v18 = vadd.f32 %v1173_v44, %v1091_v54 }
 0x279   : > { %v1444_v0 = vadd.f32 3.0, %v1428_v13  ;;  %v1445_v7 = vadd.f32 3.0, %v1429_v10  ;;  %v1301_v21 = vpop.permute.xlu1 %1300  ;;  %v1303_v56 = vpop.permute.xlu0 %1302 }
 0x27a   : > { %v1327_v35 = vsel %vm1320_vm8, %v1301_v21, %v1317_v45  ;;  %v1335_v51 = vsel %vm1320_vm8, %v1317_v45, %v1301_v21  ;;  %v1188_v3 = vadd.f32 %v1172_v26, %v1090_v38  ;;  %v1287_v37 = vadd.f32 %v1271_v47, %v1189_v18  ;;  %v1549_v18 = vld [vmem:[%s3515_s4 + $0x18] sm:$0xff] }
 0x27b   : > { %v1366_v12 = vmul.f32 %v1350_v43, %v1327_v35  ;;  %v1367_v27 = vmul.f32 %v1351_v46, %v1335_v51  ;;  %v1460_v19 = vmax.f32 %v1444_v0, 0.0  ;;  %v1461_v5 = vmax.f32 %v1445_v7, 0.0 }
 0x27c   : > { %v1286_v8 = vadd.f32 %v1270_v42, %v1188_v3 }
 0x27d   : > { %v1412_v23 = vpop.permute.xlu1 %1411  ;;  %v1382_v60 = vadd.f32 %v1366_v12, %v1284_v11  ;;  %v1383_v53 = vadd.f32 %v1367_v27, %v1285_v39  ;;  %v1476_v33 = vmin.f32 %v1460_v19, 6.0  ;;  %v1477_v31 = vmin.f32 %v1461_v5, 6.0  ;;  %v1416_v39 = vpop.permute.xlu0 %1415 }
 0x27f   : > { %v1430_v22 = vadd.f32 %v1412_v23, %v1382_v60  ;;  %v1431_v55 = vadd.f32 %v1412_v23, %v1383_v53  ;;  %v1492_v36 = vmul.f32 %v1476_v33, %v1428_v13  ;;  %v1493_v15 = vmul.f32 %v1477_v31, %v1429_v10  ;;  %v1546_v53 = vld [vmem:[%s3515_s4] sm:$0xff]  ;;  %v1547_v31 = vld [vmem:[%s3515_s4 + $0x8] sm:$0xff] }
 0x281   : > { %v1446_v49 = vadd.f32 3.0, %v1430_v22  ;;  %v1447_v24 = vadd.f32 3.0, %v1431_v55  ;;  %v1319_v62 = vpop.permute.xlu1 %1318  ;;  %v3324_v63 = vmul.f32 0.16666667, %v1492_v36  ;;  %v3326_v41 = vmul.f32 0.16666667, %v1493_v15 }
 0x282   : > { %v1328_v29 = vsel %vm1320_vm8, %v1303_v56, %v1319_v62  ;;  %v1336_v13 = vsel %vm1320_vm8, %v1319_v62, %v1303_v56  ;;  %v1550_v62 = vld [vmem:[%s3515_s4 + $0x20] sm:$0xff] }
 0x283   : > { %v1462_v10 = vmax.f32 %v1446_v49, 0.0  ;;  %v1463_v20 = vmax.f32 %v1447_v24, 0.0  ;;  %v1368_v17 = vmul.f32 %v1352_v50, %v1328_v29  ;;  %v1369_v43 = vmul.f32 %v1353_v28, %v1336_v13  ;;  %v1551_v29 = vld [vmem:[%s3515_s4 + $0x28] sm:$0xff] }
 0x284   : > { %v1529_v46 = vadd.f32 %v3326_v41, %v3324_v63 }
 0x285   : > { %v1478_v1 = vmin.f32 %v1462_v10, 6.0  ;;  %v1479_v32 = vmin.f32 %v1463_v20, 6.0  ;;  %v1384_v48 = vadd.f32 %v1368_v17, %v1286_v8  ;;  %v1385_v11 = vadd.f32 %v1369_v43, %v1287_v37 }
 0x286   : > { %1530 = vadd.xlane.f32.xlu1 %v1529_v46  ;;  %v1552_v46 = vld [vmem:[%s3515_s4 + $0x30] sm:$0xff] }
 0x287   : > { %v1494_v0 = vmul.f32 %v1478_v1, %v1430_v22  ;;  %v1495_v7 = vmul.f32 %v1479_v32, %v1431_v55  ;;  %v1432_v45 = vadd.f32 %v1416_v39, %v1384_v48  ;;  %v1433_v21 = vadd.f32 %v1416_v39, %v1385_v11  ;;  %v1548_v55 = vld [vmem:[%s3515_s4 + $0x10] sm:$0xff] }
 0x289   : > { %v3334_v16 = vmul.f32 0.16666667, %v1494_v0  ;;  %v3336_v4 = vmul.f32 0.16666667, %v1495_v7  ;;  %v1448_v30 = vadd.f32 3.0, %v1432_v45  ;;  %v1449_v35 = vadd.f32 3.0, %v1433_v21 }
 0x28b   : > { %v1532_v51 = vadd.f32 %v3336_v4, %v3334_v16  ;;  %v1464_v57 = vmax.f32 %v1448_v30, 0.0  ;;  %v1465_v25 = vmax.f32 %v1449_v35, 0.0 }
 0x28d   : > { %1533 = vadd.xlane.f32.xlu0 %v1532_v51  ;;  %v1480_v12 = vmin.f32 %v1464_v57, 6.0  ;;  %v1481_v27 = vmin.f32 %v1465_v25, 6.0 }
 0x28f   : > { %v1496_v19 = vmul.f32 %v1480_v12, %v1432_v45  ;;  %v1497_v5 = vmul.f32 %v1481_v27, %v1433_v21  ;;  %v1553_v45 = vld [vmem:[%s3515_s4 + $0x38] sm:$0xff] }
 0x291   : > { %v3340_v34 = vmul.f32 0.16666667, %v1496_v19  ;;  %v3342_v40 = vmul.f32 0.16666667, %v1497_v5 }
 0x293   : > { %v1535_v26 = vadd.f32 %v3342_v40, %v3340_v34 }
 0x295   : > { %1536 = vadd.xlane.f32.xlu1 %v1535_v26 }
 0x2aa   : > { %v1519_v44 = vpop.xlane.xlu0 %1518 }
 0x2ab   : > { %v1539_v33 = vmul.f32 0.00390625, %v1519_v44 }
 0x2ad   : > { %v1555_v47 = vmul.f32 %v1547_v31, %v1539_v33  ;;  %v1583_v33 = vld [vmem:[%s3516_s5] sm:$0x1] }
 0x2ae   : > { %v1522_v38 = vpop.xlane.xlu0 %1521 }
 0x2af   : > { %v1540_v22 = vmul.f32 0.00390625, %v1522_v38  ;;  %v1563_v50 = vsel %vm402_vm0, %v1555_v47, 0.0  ;;  %v1593_v47 = vld [vmem:[%s3517_s6 + $0x38] sm:$0xff] }
 0x2b1   : > { %v1556_v28 = vmul.f32 %v1548_v55, %v1540_v22  ;;  %v1592_v22 = vld [vmem:[%s3517_s6 + $0x30] sm:$0xff] }
 0x2b3   : > { %v1516_v23 = vpop.xlane.xlu1 %1515  ;;  %v1565_v10 = vsel %vm402_vm0, %v1556_v28, 0.0 }
 0x2b4   : > { %v1538_v60 = vmul.f32 0.00390625, %v1516_v23  ;;  %v3635_v23 = vlaneseq }
 0x2b6   : > { %v1554_v54 = vmul.f32 %v1546_v53, %v1538_v60  ;;  %v1595_v60 = vshrl.u32 %v3635_v23, 7 }
 0x2b7   : > { %v1525_v42 = vpop.xlane.xlu1 %1524 }
 0x2b8   : > { %v1562_v15 = vsel %vm402_vm0, %v1554_v54, 0.0  ;;  %v1541_v3 = vmul.f32 0.00390625, %v1525_v42  ;;  %v1596_v38 = vsub.s32 0, %v1595_v60 }
 0x2b9   : > { %v1564_v24 = vadd.f32 %v1563_v50, %v1562_v15  ;;  %v1590_v15 = vld [vmem:[%s3517_s6 + $0x20] sm:$0xff] }
 0x2ba   : > { %v1557_v8 = vmul.f32 %v1549_v18, %v1541_v3 }
 0x2bb   : > { %v1566_v43 = vadd.f32 %v1565_v10, %v1564_v24  ;;  %v1589_v24 = vld [vmem:[%s3517_s6 + $0x18] sm:$0xff]  ;;  %v1587_v10 = vld [vmem:[%s3517_s6 + $0x8] sm:$0xff] }
 0x2bc   : > { %v1567_v1 = vsel %vm402_vm0, %v1557_v8, 0.0 }
 0x2bd   : > { %v1568_v39 = vadd.f32 %v1567_v1, %v1566_v43 }
 0x2fd   : > { %v1528_v36 = vpop.xlane.xlu0 %1527 }
 0x2fe   : > { %v1542_v49 = vmul.f32 0.00390625, %v1528_v36  ;;  %v1591_v36 = vld [vmem:[%s3517_s6 + $0x28] sm:$0xff] }
 0x300   : > { %v1558_v20 = vmul.f32 %v1550_v62, %v1542_v49  ;;  %v1588_v62 = vld [vmem:[%s3517_s6 + $0x10] sm:$0xff] }
 0x302   : > { %v1569_v48 = vsel %vm402_vm0, %v1558_v20, 0.0  ;;  %v1586_v20 = vld [vmem:[%s3517_s6] sm:$0xff] }
 0x303   : > { %v1570_v7 = vadd.f32 %v1569_v48, %v1568_v39 }
 0x30f   : > { %v1531_v56 = vpop.xlane.xlu1 %1530 }
 0x310   : > { %v1543_v37 = vmul.f32 0.00390625, %v1531_v56 }
 0x312   : > { %v1559_v32 = vmul.f32 %v1551_v29, %v1543_v37 }
 0x314   : > { %v1571_v0 = vsel %vm402_vm0, %v1559_v32, 0.0 }
 0x315   : > { %v1572_v51 = vadd.f32 %v1571_v0, %v1570_v7  ;;  %v1999_v7 = vld [vmem:[%s3514_s3 + $0x38] sm:$0xff] }
 0x316   : > { %v1534_v13 = vpop.xlane.xlu0 %1533 }
 0x317   : > { %v1544_v17 = vmul.f32 0.00390625, %v1534_v13 }
 0x319   : > { %v1560_v11 = vmul.f32 %v1552_v46, %v1544_v17 }
 0x31b   : > { %v1573_v30 = vsel %vm402_vm0, %v1560_v11, 0.0  ;;  %v2116_v11 = vmov 2  }
 0x31c   : > { %v1574_v25 = vadd.f32 %v1573_v30, %v1572_v51  ;;  %1988 = vset.pattern.permute.xlu1 %v2116_v11  ;;  %1987 = vset.pattern.permute.xlu0 %v2116_v11 }
 0x31e   : > { %v1537_v21 = vpop.xlane.xlu1 %1536 }
 0x31f   : > { %v1545_v35 = vmul.f32 0.00390625, %v1537_v21  ;;  %v2000_v21 = vld [vmem:[%s3514_s3 + $0x30] sm:$0xff] }
 0x321   : > { %v1561_v57 = vmul.f32 %v1553_v45, %v1545_v35 }
 0x323   : > { %v1575_v12 = vsel %vm402_vm0, %v1561_v57, 0.0 }
 0x324   : > { %v1576_v27 = vadd.f32 %v1575_v12, %v1574_v25 }
 0x326   : > { %v1577_v19 = vrot.slane %v1576_v27, 4 }
 0x328   : > { %v1578_v5 = vadd.f32 %v1577_v19, %v1576_v27  ;;  %v2001_v19 = vld [vmem:[%s3514_s3 + $0x28] sm:$0xff] }
 0x32a   : > { %v1579_v26 = vrot.slane %v1578_v5, 2 }
 0x32c   : > { %v1580_v44 = vadd.f32 %v1579_v26, %v1578_v5  ;;  %v2002_v26 = vld [vmem:[%s3514_s3 + $0x20] sm:$0xff] }
 0x32e   : > { %v1581_v53 = vrot.slane %v1580_v44, 1 }
 0x330   : > { %v1582_v31 = vadd.f32 %v1581_v53, %v1580_v44 }
 0x332   : > { %v1584_v54 = vadd.f32 %v1583_v33, %v1582_v31 }
 0x334   : > { %v1585_v42 = vmax.f32 %v1584_v54, 0.0 }
 0x336   : > { %v1597_v55 = vrot.slane %v1585_v42, %v1596_v38 }
 0x338   : > { %v1605_v3 = vmul.f32 %v1597_v55, %v1593_v47  ;;  %v1604_v18 = vmul.f32 %v1597_v55, %v1592_v22  ;;  %v1603_v28 = vmul.f32 %v1597_v55, %v1591_v36  ;;  %v1602_v49 = vmul.f32 %v1597_v55, %v1590_v15  ;;  %v2004_v15 = vld [vmem:[%s3514_s3 + $0x10] sm:$0xff] }
 0x339   : > { %v1601_v29 = vmul.f32 %v1597_v55, %v1589_v24  ;;  %v1600_v13 = vmul.f32 %v1597_v55, %v1588_v62  ;;  %v1599_v46 = vmul.f32 %v1597_v55, %v1587_v10  ;;  %v1598_v1 = vmul.f32 %v1597_v55, %v1586_v20  ;;  %v2003_v55 = vld [vmem:[%s3514_s3 + $0x18] sm:$0xff]  ;;  %v2005_v62 = vld [vmem:[%s3514_s3] sm:$0xff] }
 0x33a   : > { %v1627_v56 = vsel %vm402_vm0, %v1605_v3, 0.0  ;;  %v1624_v50 = vsel %vm402_vm0, %v1604_v18, 0.0  ;;  %v1621_v8 = vsel %vm402_vm0, %v1603_v28, 0.0  ;;  %v1618_v37 = vsel %vm402_vm0, %v1602_v49, 0.0 }
 0x33b   : > { %1628 = vadd.xlane.f32.xlu1 %v1627_v56  ;;  %1625 = vadd.xlane.f32.xlu0 %v1624_v50  ;;  %v1615_v17 = vsel %vm402_vm0, %v1601_v29, 0.0  ;;  %v1612_v43 = vsel %vm402_vm0, %v1600_v13, 0.0  ;;  %v1609_v32 = vsel %vm402_vm0, %v1599_v46, 0.0  ;;  %v1606_v48 = vsel %vm402_vm0, %v1598_v1, 0.0 }
 0x33f   : > { %1622 = vadd.xlane.f32.xlu1 %v1621_v8  ;;  %1619 = vadd.xlane.f32.xlu0 %v1618_v37 }
 0x343   : > { %1616 = vadd.xlane.f32.xlu1 %v1615_v17  ;;  %1613 = vadd.xlane.f32.xlu0 %v1612_v43  ;;  %v2006_v17 = vld [vmem:[%s3514_s3 + $0x8] sm:$0xff] }
 0x347   : > { %1610 = vadd.xlane.f32.xlu1 %v1609_v32  ;;  %1607 = vadd.xlane.f32.xlu0 %v1606_v48 }
 0x3c4   : > { %v1629_v39 = vpop.xlane.xlu1 %1628  ;;  %v1626_v0 = vpop.xlane.xlu0 %1625 }
 0x3c5   : > { %v1637_v45 = vadd.f32 %v1999_v7, %v1629_v39  ;;  %v1636_v30 = vadd.f32 %v2000_v21, %v1626_v0 }
 0x3c7   : > { %v1645_v35 = vadd.f32 3.0, %v1637_v45  ;;  %v1644_v51 = vadd.f32 3.0, %v1636_v30 }
 0x3c8   : > { %v1623_v57 = vpop.xlane.xlu1 %1622  ;;  %v1620_v25 = vpop.xlane.xlu0 %1619 }
 0x3c9   : > { %v1653_v12 = vmax.f32 %v1645_v35, 0.0  ;;  %v1652_v27 = vmax.f32 %v1644_v51, 0.0  ;;  %v1635_v5 = vadd.f32 %v2001_v19, %v1623_v57  ;;  %v1634_v44 = vadd.f32 %v2002_v26, %v1620_v25 }
 0x3ca   : > { %v2117_v35 = vmov 3  }
 0x3cb   : > { %v1661_v23 = vmin.f32 %v1653_v12, 6.0  ;;  %v1660_v60 = vmin.f32 %v1652_v27, 6.0  ;;  %v1643_v53 = vadd.f32 3.0, %v1635_v5  ;;  %v1642_v33 = vadd.f32 3.0, %v1634_v44 }
 0x3cc   : > { %v1617_v31 = vpop.xlane.xlu1 %1616  ;;  %v1614_v38 = vpop.xlane.xlu0 %1613 }
 0x3cd   : > { %v1669_v54 = vmul.f32 0.16666667, %v1661_v23  ;;  %v1668_v42 = vmul.f32 0.16666667, %v1660_v60  ;;  %v1651_v47 = vmax.f32 %v1643_v53, 0.0  ;;  %v1650_v22 = vmax.f32 %v1642_v33, 0.0 }
 0x3ce   : > { %v1633_v36 = vadd.f32 %v2003_v55, %v1617_v31  ;;  %v1632_v3 = vadd.f32 %v2004_v15, %v1614_v38 }
 0x3cf   : > { %v1658_v18 = vmin.f32 %v1650_v22, 6.0  ;;  %1707 = vperm.xlu1 %1988, %v1669_v54   ;;  %1702 = vperm.xlu0 %1987, %v1668_v42   ;;  %v1659_v56 = vmin.f32 %v1651_v47, 6.0 }
 0x3d0   : > { %v1640_v50 = vadd.f32 3.0, %v1632_v3  ;;  %v1608_v28 = vpop.xlane.xlu0 %1607  ;;  %v1641_v24 = vadd.f32 3.0, %v1633_v36  ;;  %v1611_v29 = vpop.xlane.xlu1 %1610  ;;  %v3636_v36 = vld [vmem:[#allocation27_spill] sm:$0xff] }
 0x3d1   : > { %v1666_v49 = vmul.f32 0.16666667, %v1658_v18  ;;  %v1630_v8 = vadd.f32 %v2005_v62, %v1608_v28  ;;  %v1667_v13 = vmul.f32 0.16666667, %v1659_v56  ;;  %v1631_v43 = vadd.f32 %v2006_v17, %v1611_v29  ;;  %v2007_v28 = vld [vmem:[%s2236_s13] sm:$0xff] }
 0x3d2   : > { %v1648_v37 = vmax.f32 %v1640_v50, 0.0  ;;  %v1649_v10 = vmax.f32 %v1641_v24, 0.0 }
 0x3d3   : > { %1692 = vperm.xlu1 %1988, %v1666_v49   ;;  %v1638_v46 = vadd.f32 3.0, %v1630_v8  ;;  %v1639_v48 = vadd.f32 3.0, %v1631_v43  ;;  %1990 = vset.pattern.permute.xlu0 %v2117_v35  ;;  %v2008_v8 = vld [vmem:[%s2236_s13 + $0x8] sm:$0xff]  ;;  %v2010_v43 = vld [vmem:[%s2236_s13 + $0x18] sm:$0xff] }
 0x3d4   : > { %v1656_v20 = vmin.f32 %v1648_v37, 6.0  ;;  %v1657_v1 = vmin.f32 %v1649_v10, 6.0  ;;  %1741 = vperm.xlu0 %1990, %v2006_v17   ;;  %v2009_v10 = vld [vmem:[%s2236_s13 + $0x10] sm:$0xff] }
 0x3d5   : > { %v1646_v11 = vmax.f32 %v1638_v46, 0.0  ;;  %v1647_v0 = vmax.f32 %v1639_v48, 0.0 }
 0x3d6   : > { %v1664_v32 = vmul.f32 0.16666667, %v1656_v20  ;;  %v1665_v39 = vmul.f32 0.16666667, %v1657_v1 }
 0x3d7   : > { %1697 = vperm.xlu1 %1988, %v1667_v13   ;;  %v1654_v7 = vmin.f32 %v1646_v11, 6.0  ;;  %v1655_v45 = vmin.f32 %v1647_v0, 6.0 }
 0x3d9   : > { %v1662_v21 = vmul.f32 0.16666667, %v1654_v7  ;;  %v1663_v30 = vmul.f32 0.16666667, %v1655_v45 }
 0x3db   : > { %1682 = vperm.xlu1 %1988, %v1664_v32  }
 0x3df   : > { %1687 = vperm.xlu1 %1988, %v1665_v39  }
 0x3e3   : > { %1672 = vperm.xlu1 %1988, %v1662_v21  }
 0x3e7   : > { %1677 = vperm.xlu1 %1988, %v1663_v30  }
 0x3eb   : > { %1989 = vset.pattern.permute.xlu1 %v2117_v35 }
 0x3ec   : > { %1737 = vperm.xlu1 %1989, %v2005_v62  }
 0x44a   : > { %v1708_v51 = vpop.permute.xlu1 %1707  ;;  %v1703_v57 = vpop.permute.xlu0 %1702 }
 0x44b   : > { %v1724_v25 = vmul.f32 %v1708_v51, %v3340_v34  ;;  %v1725_v12 = vmul.f32 %v1708_v51, %v3342_v40  ;;  %v1722_v27 = vmul.f32 %v1703_v57, %v3334_v16  ;;  %v1723_v19 = vmul.f32 %v1703_v57, %v3336_v4 }
 0x44d   : > { %v1735_v5 = vpack.c.bf16 %v1725_v12, %v1723_v19  ;;  %v1734_v26 = vpack.c.bf16 %v1724_v25, %v1722_v27 }
 0x44e   : > { %v1693_v44 = vpop.permute.xlu1 %1692 }
 0x44f   : > { %1761 = vmatprep.subr.bf16.mxu1 %v1735_v5  ;;  %v1718_v60 = vmul.f32 %v1693_v44, %v3280_v58  ;;  %v1719_v53 = vmul.f32 %v1693_v44, %v3282_v14  ;;  %v1742_v50 = vpop.permute.xlu0 %1741 }
 0x450   : > { %1762 = vmatpush1.bf16.msra.mxu1 %v1734_v26 }
 0x452   : > { %v1698_v23 = vpop.permute.xlu1 %1697 }
 0x453   : > { %v1720_v33 = vmul.f32 %v1698_v23, %v3324_v63  ;;  %v1721_v34 = vmul.f32 %v1698_v23, %v3326_v41 }
 0x455   : > { %v1732_v31 = vpack.c.bf16 %v1720_v33, %v1718_v60  ;;  %v1733_v40 = vpack.c.bf16 %v1721_v34, %v1719_v53 }
 0x456   : > { %v1683_v38 = vpop.permute.xlu1 %1682 }
 0x457   : > { %1763 = vmatprep.subr.bf16.mxu1 %v1733_v40  ;;  %v1714_v4 = vmul.f32 %v1683_v38, %v3122_v9  ;;  %v1715_v54 = vmul.f32 %v1683_v38, %v3124_v6  ;;  %v3637_v9 = vld [vmem:[#allocation15_spill] sm:$0xff] }
 0x458   : > { %1764 = vmatpush1.bf16.msra.mxu1 %v1732_v31 }
 0x45a   : > { %v1688_v16 = vpop.permute.xlu1 %1687 }
 0x45b   : > { %v1716_v42 = vmul.f32 %v1688_v16, %v3149_v59  ;;  %v1717_v58 = vmul.f32 %v1688_v16, %v3151_v61  ;;  %v1995_v61 = vld [vmem:[%s3518_s7] sm:$0xff]  }
 0x45d   : > { %v1730_v47 = vpack.c.bf16 %v1716_v42, %v1714_v4  ;;  %v1731_v14 = vpack.c.bf16 %v1717_v58, %v1715_v54 }
 0x45e   : > { %v1673_v63 = vpop.permute.xlu1 %1672 }
 0x45f   : > { %1765 = vmatprep.subr.bf16.mxu1 %v1731_v14  ;;  %v1710_v22 = vmul.f32 %v1673_v63, %v3136_v2  ;;  %v1711_v55 = vmul.f32 %v1673_v63, %v3140_v52 }
 0x460   : > { %1766 = vmatpush1.bf16.msra.mxu1 %v1730_v47 }
 0x462   : > { %v1678_v41 = vpop.permute.xlu1 %1677 }
 0x463   : > { %v1712_v15 = vmul.f32 %v1678_v41, %v3636_v36  ;;  %v1713_v6 = vmul.f32 %v1678_v41, %v3637_v9 }
 0x465   : > { %v1728_v3 = vpack.c.bf16 %v1712_v15, %v1710_v22  ;;  %v1729_v59 = vpack.c.bf16 %v1713_v6, %v1711_v55 }
 0x467   : > { %1767 = vmatprep.subr.bf16.mxu1 %v1729_v59  ;;  %v1738_v2 = vpop.permute.xlu1 %1737 }
 0x468   : > { %1768 = vmatpush1.bf16.msra.mxu1 %v1728_v3 }
 0x46b   : > { %1910 = vmatmul.mubr.msk.bf16.vlgmr.msra.gmra.mxu1 %vm1749_vm9, %v1995_v61 }
 0x52b   : > { %v1787_v52 = vpop.f32.mrf.mxu1 }
 0x52c   : > { %v1788_v18 = vadd.f32 %v1787_v52, %v1738_v2 }
 0x52d   : > { %v1789_v56 = vpop.f32.mrf.mxu1 }
 0x52e   : > { %v1796_v49 = vadd.f32 %v2007_v28, %v1788_v18  ;;  %v1790_v24 = vadd.f32 %v1789_v56, %v1738_v2 }
 0x52f   : > { %v1791_v62 = vpop.f32.mrf.mxu1 }
 0x530   : > { %1800 = vst [vmem:[%s313_s19] sm:$0xff] %v1796_v49  ;;  %v1797_v37 = vadd.f32 %v2008_v8, %v1790_v24  ;;  %v1792_v29 = vadd.f32 %v1791_v62, %v1742_v50 }
 0x531   : > { %v1793_v13 = vpop.f32.mrf.mxu1 }
 0x532   : > { %1801 = vst [vmem:[%s313_s19 + $0x8] sm:$0xff] %v1797_v37  ;;  %v1798_v20 = vadd.f32 %v2009_v10, %v1792_v29  ;;  %v1794_v17 = vadd.f32 %v1793_v13, %v1742_v50 }
 0x534   : > { %1802 = vst [vmem:[%s313_s19 + $0x10] sm:$0xff] %v1798_v20  ;;  %v1799_v46 = vadd.f32 %v2010_v43, %v1794_v17 }
 0x536   : > { %1803 = vst [vmem:[%s313_s19 + $0x18] sm:$0xff] %v1799_v46 }
 0x537   : > { %2050 = shalt.err (!%p2047_p0)
}
 0x538   : > { %s2051_s13 = scalar_lea.hbm %s3468_s24, 512  ;;  %s2055_s21 = scalar_lea.hbm %s3519_s8, 1024 }
 0x539   : > { %p2052_p1 = scmp.ne.s32.totalorder %s3468_s24, %s2051_s13  ;;  %p2056_p4 = scmp.lt.s32.totalorder %s3468_s24, %s3519_s8 }
 0x53a   : > { %p2057_p7 = scmp.lt.s32.totalorder %s2055_s21, %s2051_s13 }
 0x53b   : > { %p2053_p2 = pnand %p2052_p1, %p2203_p5 }
 0x53c   : > { %p2058_p8 = por %p2057_p7, %p2056_p4 }
 0x53d   : > { %p2054_p3 = pneg %p2053_p2 }
 0x53f   : > { %p2059_p6 = pnand %p2058_p8, %p2054_p3 }
 0x541   : > { %2062 = shalt.err (!%p2059_p6)
}
 0x542   : > { %s2119_s9 = smov 256  }
 0x543   : > { %1922 = dma.vmem_to_hbm [thread:$0]  (%p2203_p5), %s3462_s20, 512, %s3468_s24, %s3470_s25, %s2119_s9, %s2119_s9, %s2109_s18  }
 0x544 PF: > { %p1934_p9 = scmp.ge.s32.totalorder %s2101_s30, 2  ;;  %s1833_s26 = sand.u32 1, %s2089_s27  }
 0x545   : > { %p3638_p10 = scmp.ne.s32.totalorder %s3560_s16, 0  ;;  %s1834_s10 = scalar_lea.sflag [#allocation4], %s1833_s26 }
 0x547   : > { %p1929_p11 = pnand %p1934_p9, %p3638_p10 }
 0x549   : > { %p1930_p12 = pneg %p1929_p11 }
 0x54b   : > { %2084 = dma.done.wait (%p1930_p12), %s1834_s10, 512  }
 0x54c   : > { %2086 = vsyncadd (%p1930_p12), %s1834_s10, 4294966784  ;;  %p19_p13 = scmp.ge.s32.totalorder %s2190_s11, 4   ;;  %s3639_s27 = smov %s2093_s28 }
 0x54d   : > { %s3640_s28 = smov %s2097_s29  ;;  %s3641_s29 = smov %s2201_s14 }
 0x54e   : > { %s3642_s30 = smov %s2190_s11  ;;  %21 = sbr.rel (!%p19_p13) target bundleno = 4 (0x4), region = 100 }
 0x553   :  { %1839 = vsyncpa [#allocation3], 1 }
 0x554   :  { %1841 = vsyncpa [#allocation3 + $0x1], 1 }
 0x555   :  { %1842 = vsyncpa [#allocation4], 1 }
 0x556   :  { %1844 = vsyncpa [#allocation4 + $0x1], 1 }

</bundles_post_ra>
